<compile_context>
chip_gen: v7x
topology: tpu7x:2x2x1
jax: 0.10.0
libtpu: 0.0.40
codegen_flags: <defaults>
</compile_context>

<pallas_src>
import functools

import jax
import jax.numpy as jnp
from jax.experimental import pallas as pl
from jax.experimental.pallas import tpu as pltpu


def _round_up(x, m):
    return ((x + m - 1) // m) * m


def _nbytes(x):
    return int(x.size) * int(x.dtype.itemsize)


def _vmem_limit(est_bytes):
    # Headroom over the resident-block estimate; stays modest so it also fits
    # v7x's 64 MiB unless the problem genuinely needs more (v5e/v6e: 128 MiB).
    return int(min(max(est_bytes + (8 << 20), 16 << 20), 96 << 20))


# --------------------- fused path: whole graph in one grid step ---------------------

def _gin_kernel_fused(A_ref, H_ref, snorm_ref, M_ref,
                      Wemb_ref, W1_ref, b1_ref, W2_ref, b2_ref,
                      bngs_ref, bngb_ref, Wro_ref, Wpred_ref, bpred_ref,
                      out_ref, *, n_layers, eps_gin):
    f32, bf16 = jnp.float32, jnp.bfloat16

    # int8 adjacency -> bf16 once (binary => exact), hoisted out of the layer loop.
    a_bf = A_ref[...].astype(f32).astype(bf16)

    h0 = jnp.dot(H_ref[...], Wemb_ref[...], preferred_element_type=f32)  # embedding
    snorm = snorm_ref[...]

    def layer(l, h):
        neigh = jnp.dot(a_bf, h.astype(bf16), preferred_element_type=f32)
        x = (1.0 + eps_gin) * h + neigh
        x = jnp.maximum(jnp.dot(x.astype(bf16), W1_ref[l],
                                preferred_element_type=f32) + b1_ref[l], 0.0)
        x = jnp.maximum(jnp.dot(x.astype(bf16), W2_ref[l],
                                preferred_element_type=f32) + b2_ref[l], 0.0)
        x = x * snorm
        x = jnp.maximum(x * bngs_ref[l] + bngb_ref[l], 0.0)
        # TODO(synk): dropout / Bayesian weight sampling omitted (eval-mode, mean weights).
        return x + h0                             # residual: fixed embedded input

    h = jax.lax.fori_loop(0, n_layers, layer, h0, unroll=True)

    hg = jnp.dot(M_ref[...], h, preferred_element_type=f32)              # mean readout
    hro = jnp.dot(hg, Wro_ref[...], preferred_element_type=f32)
    out_ref[...] = jnp.dot(hro, Wpred_ref[...],
                           preferred_element_type=f32) + bpred_ref[...]


# --------------------- tiled path: (layer, node-tile) grid ---------------------------

def _gin_kernel_tiled(A_ref, H_ref, snorm_ref, M_ref,
                      Wemb_ref, W1_ref, b1_ref, W2_ref, b2_ref,
                      bngs_ref, bngb_ref, Wro_ref, Wpred_ref, bpred_ref,
                      out_ref, h_buf, hin_buf,
                      *, n_layers, n_tiles, tile_n, eps_gin, a_resident):
    f32, bf16 = jnp.float32, jnp.bfloat16
    l = pl.program_id(0)      # layer index (sequential dependency)
    t = pl.program_id(1)      # node row-tile index

    # one-time init: embedding over ALL nodes, stored bf16 (h) + f32 (residual source)
    @pl.when(jnp.logical_and(l == 0, t == 0))
    def _():
        emb = jnp.dot(H_ref[...], Wemb_ref[...], preferred_element_type=f32)
        hin_buf[...] = emb
        h_buf[0] = emb.astype(bf16)

    row = pl.multiple_of(t * tile_n, tile_n)
    src = l % 2
    dst = 1 - src
    h_src = h_buf.at[src]
    h_dst = h_buf.at[dst]

    # adjacency row tile: int8 -> bf16 (binary => exact), f32 accumulation on the MXU
    if a_resident:
        a_bf = A_ref[pl.ds(row, tile_n), :].astype(f32).astype(bf16)
    else:
        a_bf = A_ref[...].astype(f32).astype(bf16)

    h_all = h_src[...]                                                    # bf16 [Npad, hidden]
    neigh = jnp.dot(a_bf, h_all, preferred_element_type=f32)              # [tile_n, hidden]

    h_tile = h_src[pl.ds(row, tile_n), :].astype(f32)
    x = (1.0 + eps_gin) * h_tile + neigh
    x = jnp.maximum(jnp.dot(x.astype(bf16), W1_ref[0],
                            preferred_element_type=f32) + b1_ref[0], 0.0)
    x = jnp.maximum(jnp.dot(x.astype(bf16), W2_ref[0],
                            preferred_element_type=f32) + b2_ref[0], 0.0)
    x = x * snorm_ref[...]
    x = jnp.maximum(x * bngs_ref[0] + bngb_ref[0], 0.0)
    # TODO(synk): dropout / Bayesian weight sampling omitted (eval-mode, mean weights).
    h_new = x + hin_buf[pl.ds(row, tile_n), :]
    h_dst[pl.ds(row, tile_n), :] = h_new.astype(bf16)

    # finalize at the last grid point: readout + prediction (tiny, f32)
    @pl.when(jnp.logical_and(l == n_layers - 1, t == n_tiles - 1))
    def _():
        h_final = h_buf[n_layers % 2].astype(f32)                         # static index
        hg = jnp.dot(M_ref[...], h_final, preferred_element_type=f32)     # [G, hidden]
        hro = jnp.dot(hg, Wro_ref[...], preferred_element_type=f32)       # [G, out_dim]
        out_ref[...] = jnp.dot(hro, Wpred_ref[...],
                               preferred_element_type=f32) + bpred_ref[...]


# ------------------------------- host-side helpers ----------------------------------

def _bn_fold(gamma, beta, mean, var, eps=1e-5):
    scale = gamma / jnp.sqrt(var + eps)
    return scale, beta - mean * scale


def prepare_params(raw, *, bn_eps=1e-5):
    """Transpose weights to [in, out], fold eval-BN into adjacent linears, cast the
    big matmul weights to bf16 (f32 accumulation happens in-kernel)."""
    f32, bf16 = jnp.float32, jnp.bfloat16

    s1, t1 = _bn_fold(raw["bn1_gamma"], raw["bn1_beta"], raw["bn1_mean"], raw["bn1_var"], bn_eps)
    sa, ta = _bn_fold(raw["bna_gamma"], raw["bna_beta"], raw["bna_mean"], raw["bna_var"], bn_eps)
    sg, tg = _bn_fold(raw["bng_gamma"], raw["bng_beta"], raw["bng_mean"], raw["bng_var"], bn_eps)

    # torch Linear weight is [out, in]; kernel wants [in, out]
    W1t = jnp.transpose(raw["W1"], (0, 2, 1))
    W2t = jnp.transpose(raw["W2"], (0, 2, 1))

    W1f = W1t * s1[:, None, :]                    # fold BN1 into MLP hidden layer
    b1f = raw["b1"] * s1 + t1
    W2f = W2t * sa[:, None, :]                    # fold ApplyNodeFunc BN into MLP out layer
    b2f = raw["b2"] * sa + ta

    return {
        "W_emb": jnp.transpose(raw["W_emb"]).astype(bf16),   # [num_atom_type, hidden]
        "W1": W1f.astype(bf16),                              # [L, hidden, hidden]
        "b1": b1f[:, None, :].astype(f32),                   # [L, 1, hidden]
        "W2": W2f.astype(bf16),
        "b2": b2f[:, None, :].astype(f32),
        "bng_scale": sg[:, None, :].astype(f32),             # [L, 1, hidden]
        "bng_shift": tg[:, None, :].astype(f32),
        "W_ro": jnp.transpose(raw["W_ro"]).astype(f32),      # [hidden, out_dim]
        "W_pred": jnp.transpose(raw["W_pred"]).astype(f32),  # [out_dim, C]
        "b_pred": raw["b_pred"].astype(f32),                 # [1, C]
    }


def gin_net_forward(A, H, snorm_n, M_mean, pp, *, n_layers, eps_gin=0.0,
                    tile_n=256, a_resident="auto"):
    """pp = prepare_params(raw).  Returns [num_graphs, num_classes] scores."""
    f32, bf16 = jnp.float32, jnp.bfloat16
    N = A.shape[0]
    G = M_mean.shape[0]
    F_atom, hidden = pp["W_emb"].shape
    out_dim = pp["W_ro"].shape[1]
    C = pp["W_pred"].shape[1]

    ALIGN = 32    # int8 sublane packing (32) and bf16 packing (16) both satisfied
    tile_n = max(ALIGN, (int(tile_n) // ALIGN) * ALIGN)

    small = _round_up(N, ALIGN) <= tile_n
    if small:
        Npad = _round_up(N, ALIGN)
        tile_n, n_tiles = Npad, 1
    else:
        n_tiles = int(pl.cdiv(N, tile_n))
        Npad = n_tiles * tile_n

    # Padded rows/cols are inert: A and M_mean have zero padded columns, snorm is zero.
    A_p = jnp.zeros((Npad, Npad), jnp.int8).at[:N, :N].set(A.astype(jnp.int8))  # binary => exact
    H_p = jnp.zeros((Npad, F_atom), bf16).at[:N, :].set(H.astype(bf16))         # one-hot => exact
    sn_p = jnp.zeros((Npad, 1), f32).at[:N, :].set(snorm_n.astype(f32))
    M_p = jnp.zeros((G, Npad), f32).at[:, :N].set(M_mean.astype(f32))

    args = (A_p, H_p, sn_p, M_p,
            pp["W_emb"], pp["W1"], pp["b1"], pp["W2"], pp["b2"],
            pp["bng_scale"], pp["bng_shift"],
            pp["W_ro"], pp["W_pred"], pp["b_pred"])

    flops = (2 * Npad * F_atom * hidden
             + n_layers * (2 * Npad * Npad * hidden + 4 * Npad * hidden * hidden)
             + 2 * G * Npad * hidden + 2 * G * hidden * out_dim + 2 * G * out_dim * C)
    out_shape = jax.ShapeDtypeStruct((G, C), f32)

    if small:
        # ---- grid collapsed to one invocation; all operands resident in VMEM ----
        def const_spec(x):
            nd = x.ndim
            return pl.BlockSpec(x.shape, lambda i, _nd=nd: (0,) * _nd)

        est = 2 * sum(_nbytes(x) for x in args) + 8 * Npad * hidden * 4
        bytes_accessed = sum(_nbytes(x) for x in args) + G * C * 4
        kernel = functools.partial(_gin_kernel_fused, n_layers=n_layers,
                                   eps_gin=float(eps_gin))
        return pl.pallas_call(
            kernel,
            out_shape=out_shape,
            grid_spec=pltpu.PrefetchScalarGridSpec(
                num_scalar_prefetch=0,
                grid=(1,),
                in_specs=[const_spec(x) for x in args],
                out_specs=pl.BlockSpec((G, C), lambda i: (0, 0))),
            compiler_params=pltpu.CompilerParams(
                dimension_semantics=("arbitrary",),
                vmem_limit_bytes=_vmem_limit(est)),
            cost_estimate=pl.CostEstimate(flops=int(flops), transcendentals=0,
                                          bytes_accessed=int(bytes_accessed)),
        )(*args)

    # ---- tiled path: grid = (layers, node-tiles) ----
    if a_resident == "auto":
        # A resident (no per-layer re-stream) only if its double buffer is v7x-safe.
        a_res = 2 * Npad * Npad <= (24 << 20)
    else:
        a_res = bool(a_resident)

    const2 = lambda l, t: (0, 0)
    per_layer3 = lambda l, t: (l, 0, 0)
    tile_row = lambda l, t: (t, 0)

    a_spec = (pl.BlockSpec((Npad, Npad), const2) if a_res
              else pl.BlockSpec((tile_n, Npad), tile_row))

    in_specs = [
        a_spec,                                          # A (int8): resident or streamed rows
        pl.BlockSpec((Npad, F_atom), const2),            # H (resident, bf16)
        pl.BlockSpec((tile_n, 1), tile_row),             # snorm tile
        pl.BlockSpec((G, Npad), const2),                 # mean-readout matrix
        pl.BlockSpec((F_atom, hidden), const2),          # W_emb
        pl.BlockSpec((1, hidden, hidden), per_layer3),   # W1 (per layer)
        pl.BlockSpec((1, 1, hidden), per_layer3),        # b1
        pl.BlockSpec((1, hidden, hidden), per_layer3),   # W2
        pl.BlockSpec((1, 1, hidden), per_layer3),        # b2
        pl.BlockSpec((1, 1, hidden), per_layer3),        # bng scale
        pl.BlockSpec((1, 1, hidden), per_layer3),        # bng shift
        pl.BlockSpec((hidden, out_dim), const2),         # W_ro
        pl.BlockSpec((out_dim, C), const2),              # W_pred
        pl.BlockSpec((1, C), const2),                    # b_pred
    ]

    a_block_bytes = Npad * Npad if a_res else tile_n * Npad
    est = (2 * Npad * hidden * 2 + Npad * hidden * 4     # bf16 ping-pong h + f32 h_in
           + 2 * a_block_bytes                           # A double buffer (int8)
           + 2 * sum(_nbytes(x) for x in args[1:])       # other inputs (over-estimate)
           + 8 * tile_n * hidden * 4)                    # in-kernel temporaries
    a_streams = 1 if a_res else n_layers
    bytes_accessed = (a_streams * _nbytes(A_p)
                      + sum(_nbytes(x) for x in args[1:]) + G * C * 4)

    kernel = functools.partial(_gin_kernel_tiled, n_layers=n_layers, n_tiles=n_tiles,
                               tile_n=tile_n, eps_gin=float(eps_gin), a_resident=a_res)

    return pl.pallas_call(
        kernel,
        out_shape=out_shape,
        grid_spec=pltpu.PrefetchScalarGridSpec(
            num_scalar_prefetch=0,
            grid=(n_layers, n_tiles),
            in_specs=in_specs,
            out_specs=pl.BlockSpec((G, C), const2),
            scratch_shapes=[
                pltpu.VMEM((2, Npad, hidden), jnp.bfloat16),  # ping-pong node features (bf16)
                pltpu.VMEM((Npad, hidden), jnp.float32),      # embedded input (residual, f32)
            ]),
        # Both grid axes carry sequential state through the VMEM scratch.
        # TODO(synk): v7x dual-TensorCore tile sharding would need VMEM_SHARED h buffers
        # (pl.core_map + core_barrier); kept single-core for cross-generation portability.
        compiler_params=pltpu.CompilerParams(
            dimension_semantics=("arbitrary", "arbitrary"),
            vmem_limit_bytes=_vmem_limit(est)),
        cost_estimate=pl.CostEstimate(flops=int(flops), transcendentals=0,
                                      bytes_accessed=int(bytes_accessed)),
    )(*args)


# ------------------------------- reference / test data -------------------------------

def _reference_forward(A, H, snorm_n, M_mean, pp, *, n_layers, eps_gin):
    """Pure-JAX f32 reference using the same prepared (folded/transposed) params."""
    f32 = jnp.float32
    up = lambda x: x.astype(f32)
    h = H.astype(f32) @ up(pp["W_emb"])
    h_in = h
    for l in range(n_layers):
        x = (1.0 + eps_gin) * h + A @ h
        x = jnp.maximum(x @ up(pp["W1"][l]) + pp["b1"][l], 0.0)
        x = jnp.maximum(x @ up(pp["W2"][l]) + pp["b2"][l], 0.0)
        x = x * snorm_n
        x = jnp.maximum(x * pp["bng_scale"][l] + pp["bng_shift"][l], 0.0)
        h = x + h_in
    hg = M_mean @ (h @ pp["W_ro"])
    return hg @ pp["W_pred"] + pp["b_pred"]


def init_params_raw(key, *, num_atom_type, hidden_dim, out_dim, n_layers, num_classes):
    # Deterministic init, torch layout ([out, in] weights) + fresh eval-mode BN stats.
    # TODO(synk): Bayesian weight sampling (mu + sigma*eps) not modeled — deterministic mu used.
    ks = jax.random.split(key, 8)
    f32 = jnp.float32

    def nrm(k, shape, s=0.1):
        return (s * jax.random.normal(k, shape)).astype(f32)

    L, Hd = n_layers, hidden_dim
    params = {
        "W_emb": nrm(ks[0], (hidden_dim, num_atom_type)),
        "W1": nrm(ks[1], (L, Hd, Hd)),
        "b1": nrm(ks[2], (L, Hd)),
        "W2": nrm(ks[3], (L, Hd, Hd)),
        "b2": nrm(ks[4], (L, Hd)),
        "W_ro": nrm(ks[5], (out_dim, hidden_dim)),
        "W_pred": nrm(ks[6], (num_classes, out_dim)),
        "b_pred": nrm(ks[7], (1, num_classes)),
    }
    ones, zeros = jnp.ones((L, Hd), f32), jnp.zeros((L, Hd), f32)
    for name in ("bn1", "bna", "bng"):
        params[f"{name}_gamma"] = ones
        params[f"{name}_beta"] = zeros
        params[f"{name}_mean"] = zeros
        params[f"{name}_var"] = ones
    return params


def build_batched_graph(key, graph_sizes, num_atom_type):
    """Block-diagonal dense adjacency, one-hot node features, snorm_n, mean-readout matrix."""
    f32 = jnp.float32
    N = int(sum(graph_sizes))
    G = len(graph_sizes)
    A = jnp.zeros((N, N), f32)
    snorm = jnp.zeros((N, 1), f32)
    M_mean = jnp.zeros((G, N), f32)
    off = 0
    keys = jax.random.split(key, G + 1)
    for gi, s in enumerate(graph_sizes):
        blk = jax.random.bernoulli(keys[gi], 0.3, (s, s)).astype(f32)
        blk = jnp.triu(blk, 1)
        blk = blk + blk.T                                  # symmetric, no self loops
        A = A.at[off:off + s, off:off + s].set(blk)
        snorm = snorm.at[off:off + s, 0].set(1.0 / jnp.sqrt(jnp.array(s, f32)))
        M_mean = M_mean.at[gi, off:off + s].set(1.0 / s)
        off += s
    atom_types = jax.random.randint(keys[G], (N,), 0, num_atom_type)
    H = jax.nn.one_hot(atom_types, num_atom_type, dtype=f32)
    return A, H, snorm, M_mean


if __name__ == "__main__":
    # net_params (small, consistent with the module)
    num_atom_type = 16
    hidden_dim = 32
    out_dim = 32
    n_layers = 4          # L
    num_classes = 1       # task = 'regression'
    eps_gin = 0.0         # learn_eps_GIN = False

    key = jax.random.PRNGKey(0)
    k_g1, k_g2, k_param = jax.random.split(key, 3)

    raw = init_params_raw(k_param, num_atom_type=num_atom_type, hidden_dim=hidden_dim,
                          out_dim=out_dim, n_layers=n_layers, num_classes=num_classes)
    pp = prepare_params(raw)

    # 1) small batched graph (2 graphs, 24 nodes) -> fused single-invocation path
    A1, H1, sn1, M1 = build_batched_graph(k_g1, (16, 8), num_atom_type)
    s1 = jax.block_until_ready(
        gin_net_forward(A1, H1, sn1, M1, pp, n_layers=n_layers, eps_gin=eps_gin))
    r1 = _reference_forward(A1, H1, sn1, M1, pp, n_layers=n_layers, eps_gin=eps_gin)
    assert s1.shape == (2, num_classes)
    assert bool(jnp.all(jnp.isfinite(s1)))
    assert bool(jnp.allclose(s1, r1, atol=5e-2, rtol=5e-2)), ("fused mismatch", s1, r1)

    # 2) larger batched graph (3 graphs, 96 nodes) -> tiled path, streamed and resident A
    A2, H2, sn2, M2 = build_batched_graph(k_g2, (40, 36, 20), num_atom_type)
    r2 = _reference_forward(A2, H2, sn2, M2, pp, n_layers=n_layers, eps_gin=eps_gin)
    for a_res in (False, True):
        s2 = jax.block_until_ready(
            gin_net_forward(A2, H2, sn2, M2, pp, n_layers=n_layers, eps_gin=eps_gin,
                            tile_n=32, a_resident=a_res))
        assert s2.shape == (3, num_classes)
        assert bool(jnp.all(jnp.isfinite(s2)))
        assert bool(jnp.allclose(s2, r2, atol=5e-2, rtol=5e-2)), ("tiled mismatch", a_res, s2, r2)

    print("KERNEL_OK")
</pallas_src>

<mosaic_0001>
module attributes {stable_mosaic.version = 11 : i64} {
  func.func @_gin_kernel_fused(%arg0: i32, %arg1: memref<32x32xi8, #tpu.memory_space<vmem>>, %arg2: memref<32x16xbf16, #tpu.memory_space<vmem>>, %arg3: memref<32x1xf32, #tpu.memory_space<vmem>>, %arg4: memref<2x32xf32, #tpu.memory_space<vmem>>, %arg5: memref<16x32xbf16, #tpu.memory_space<vmem>>, %arg6: memref<4x32x32xbf16, #tpu.memory_space<vmem>>, %arg7: memref<4x1x32xf32, #tpu.memory_space<vmem>>, %arg8: memref<4x32x32xbf16, #tpu.memory_space<vmem>>, %arg9: memref<4x1x32xf32, #tpu.memory_space<vmem>>, %arg10: memref<4x1x32xf32, #tpu.memory_space<vmem>>, %arg11: memref<4x1x32xf32, #tpu.memory_space<vmem>>, %arg12: memref<32x32xf32, #tpu.memory_space<vmem>>, %arg13: memref<32x1xf32, #tpu.memory_space<vmem>>, %arg14: memref<1x1xf32, #tpu.memory_space<vmem>>, %arg15: memref<2x1xf32, #tpu.memory_space<vmem>>) attributes {dimension_semantics = [#tpu.dimension_semantics<arbitrary>], iteration_bounds = array<i64: 1>, scalar_prefetch = 0 : i64, scratch_operands = 0 : i64, tpu.core_type = #tpu.core_type<tc>, window_params = [{pipeline_mode = #tpu.pipeline_mode<synchronous>, transform_indices = @transform_0, window_bounds = array<i64: 32, 32>}, {pipeline_mode = #tpu.pipeline_mode<synchronous>, transform_indices = @transform_1, window_bounds = array<i64: 32, 16>}, {pipeline_mode = #tpu.pipeline_mode<synchronous>, transform_indices = @transform_2, window_bounds = array<i64: 32, 1>}, {pipeline_mode = #tpu.pipeline_mode<synchronous>, transform_indices = @transform_3, window_bounds = array<i64: 2, 32>}, {pipeline_mode = #tpu.pipeline_mode<synchronous>, transform_indices = @transform_4, window_bounds = array<i64: 16, 32>}, {pipeline_mode = #tpu.pipeline_mode<synchronous>, transform_indices = @transform_5, window_bounds = array<i64: 4, 32, 32>}, {pipeline_mode = #tpu.pipeline_mode<synchronous>, transform_indices = @transform_6, window_bounds = array<i64: 4, 1, 32>}, {pipeline_mode = #tpu.pipeline_mode<synchronous>, transform_indices = @transform_7, window_bounds = array<i64: 4, 32, 32>}, {pipeline_mode = #tpu.pipeline_mode<synchronous>, transform_indices = @transform_8, window_bounds = array<i64: 4, 1, 32>}, {pipeline_mode = #tpu.pipeline_mode<synchronous>, transform_indices = @transform_9, window_bounds = array<i64: 4, 1, 32>}, {pipeline_mode = #tpu.pipeline_mode<synchronous>, transform_indices = @transform_10, window_bounds = array<i64: 4, 1, 32>}, {pipeline_mode = #tpu.pipeline_mode<synchronous>, transform_indices = @transform_11, window_bounds = array<i64: 32, 32>}, {pipeline_mode = #tpu.pipeline_mode<synchronous>, transform_indices = @transform_12, window_bounds = array<i64: 32, 1>}, {pipeline_mode = #tpu.pipeline_mode<synchronous>, transform_indices = @transform_13, window_bounds = array<i64: 1, 1>}, {pipeline_mode = #tpu.pipeline_mode<synchronous>, transform_indices = @transform_14, window_bounds = array<i64: 2, 1>}]} {
    %c0 = arith.constant 0 : index
    %c0_0 = arith.constant 0 : index
    %0 = vector.load %arg1[%c0, %c0_0] : memref<32x32xi8, #tpu.memory_space<vmem>>, vector<32x32xi8>
    %1 = arith.sitofp %0 : vector<32x32xi8> to vector<32x32xf32>
    %2 = arith.truncf %1 : vector<32x32xf32> to vector<32x32xbf16>
    %c0_1 = arith.constant 0 : index
    %c0_2 = arith.constant 0 : index
    %3 = vector.load %arg2[%c0_1, %c0_2] : memref<32x16xbf16, #tpu.memory_space<vmem>>, vector<32x16xbf16>
    %c0_3 = arith.constant 0 : index
    %c0_4 = arith.constant 0 : index
    %4 = vector.load %arg5[%c0_3, %c0_4] : memref<16x32xbf16, #tpu.memory_space<vmem>>, vector<16x32xbf16>
    %cst = arith.constant dense<0.000000e+00> : vector<32x32xf32>
    %5 = tpu.matmul %3, %4, %cst {dimension_numbers = #tpu.dot_dimension_numbers<[1], [0], [0], [1], [0, 0, 1, 1], [], []>} : vector<32x16xbf16>, vector<16x32xbf16>, vector<32x32xf32> -> vector<32x32xf32>
    %c0_5 = arith.constant 0 : index
    %c0_6 = arith.constant 0 : index
    %6 = vector.load %arg3[%c0_5, %c0_6] : memref<32x1xf32, #tpu.memory_space<vmem>>, vector<32x1xf32>
    %c0_i32 = arith.constant 0 : i32
    %7 = arith.truncf %5 : vector<32x32xf32> to vector<32x32xbf16>
    %cst_7 = arith.constant dense<0.000000e+00> : vector<32x32xf32>
    %8 = tpu.matmul %2, %7, %cst_7 {dimension_numbers = #tpu.dot_dimension_numbers<[1], [0], [0], [1], [0, 0, 1, 1], [], []>} : vector<32x32xbf16>, vector<32x32xbf16>, vector<32x32xf32> -> vector<32x32xf32>
    %cst_8 = arith.constant 1.000000e+00 : f32
    %9 = vector.broadcast %cst_8 : f32 to vector<32x32xf32>
    %10 = arith.mulf %9, %5 : vector<32x32xf32>
    %11 = arith.addf %10, %8 : vector<32x32xf32>
    %12 = arith.truncf %11 : vector<32x32xf32> to vector<32x32xbf16>
    %13 = arith.index_cast %c0_i32 : i32 to index
    %c0_9 = arith.constant 0 : index
    %c0_10 = arith.constant 0 : index
    %14 = vector.load %arg6[%13, %c0_9, %c0_10] : memref<4x32x32xbf16, #tpu.memory_space<vmem>>, vector<1x32x32xbf16>
    %15 = vector.shape_cast %14 : vector<1x32x32xbf16> to vector<32x32xbf16>
    %cst_11 = arith.constant dense<0.000000e+00> : vector<32x32xf32>
    %16 = tpu.matmul %12, %15, %cst_11 {dimension_numbers = #tpu.dot_dimension_numbers<[1], [0], [0], [1], [0, 0, 1, 1], [], []>} : vector<32x32xbf16>, vector<32x32xbf16>, vector<32x32xf32> -> vector<32x32xf32>
    %17 = arith.index_cast %c0_i32 : i32 to index
    %c0_12 = arith.constant 0 : index
    %c0_13 = arith.constant 0 : index
    %18 = vector.load %arg7[%17, %c0_12, %c0_13] : memref<4x1x32xf32, #tpu.memory_space<vmem>>, vector<1x1x32xf32>
    %19 = vector.shape_cast %18 : vector<1x1x32xf32> to vector<1x32xf32>
    %20 = vector.broadcast %19 : vector<1x32xf32> to vector<32x32xf32>
    %21 = arith.addf %16, %20 : vector<32x32xf32>
    %cst_14 = arith.constant 0.000000e+00 : f32
    %22 = vector.broadcast %cst_14 : f32 to vector<32x32xf32>
    %23 = arith.maximumf %21, %22 : vector<32x32xf32>
    %24 = arith.truncf %23 : vector<32x32xf32> to vector<32x32xbf16>
    %25 = arith.index_cast %c0_i32 : i32 to index
    %c0_15 = arith.constant 0 : index
    %c0_16 = arith.constant 0 : index
    %26 = vector.load %arg8[%25, %c0_15, %c0_16] : memref<4x32x32xbf16, #tpu.memory_space<vmem>>, vector<1x32x32xbf16>
    %27 = vector.shape_cast %26 : vector<1x32x32xbf16> to vector<32x32xbf16>
    %cst_17 = arith.constant dense<0.000000e+00> : vector<32x32xf32>
    %28 = tpu.matmul %24, %27, %cst_17 {dimension_numbers = #tpu.dot_dimension_numbers<[1], [0], [0], [1], [0, 0, 1, 1], [], []>} : vector<32x32xbf16>, vector<32x32xbf16>, vector<32x32xf32> -> vector<32x32xf32>
    %29 = arith.index_cast %c0_i32 : i32 to index
    %c0_18 = arith.constant 0 : index
    %c0_19 = arith.constant 0 : index
    %30 = vector.load %arg9[%29, %c0_18, %c0_19] : memref<4x1x32xf32, #tpu.memory_space<vmem>>, vector<1x1x32xf32>
    %31 = vector.shape_cast %30 : vector<1x1x32xf32> to vector<1x32xf32>
    %32 = vector.broadcast %31 : vector<1x32xf32> to vector<32x32xf32>
    %33 = arith.addf %28, %32 : vector<32x32xf32>
    %cst_20 = arith.constant 0.000000e+00 : f32
    %34 = vector.broadcast %cst_20 : f32 to vector<32x32xf32>
    %35 = arith.maximumf %33, %34 : vector<32x32xf32>
    %36 = vector.broadcast %6 : vector<32x1xf32> to vector<32x32xf32>
    %37 = arith.mulf %35, %36 : vector<32x32xf32>
    %38 = arith.index_cast %c0_i32 : i32 to index
    %c0_21 = arith.constant 0 : index
    %c0_22 = arith.constant 0 : index
    %39 = vector.load %arg10[%38, %c0_21, %c0_22] : memref<4x1x32xf32, #tpu.memory_space<vmem>>, vector<1x1x32xf32>
    %40 = vector.shape_cast %39 : vector<1x1x32xf32> to vector<1x32xf32>
    %41 = vector.broadcast %40 : vector<1x32xf32> to vector<32x32xf32>
    %42 = arith.mulf %37, %41 : vector<32x32xf32>
    %43 = arith.index_cast %c0_i32 : i32 to index
    %c0_23 = arith.constant 0 : index
    %c0_24 = arith.constant 0 : index
    %44 = vector.load %arg11[%43, %c0_23, %c0_24] : memref<4x1x32xf32, #tpu.memory_space<vmem>>, vector<1x1x32xf32>
    %45 = vector.shape_cast %44 : vector<1x1x32xf32> to vector<1x32xf32>
    %46 = vector.broadcast %45 : vector<1x32xf32> to vector<32x32xf32>
    %47 = arith.addf %42, %46 : vector<32x32xf32>
    %cst_25 = arith.constant 0.000000e+00 : f32
    %48 = vector.broadcast %cst_25 : f32 to vector<32x32xf32>
    %49 = arith.maximumf %47, %48 : vector<32x32xf32>
    %50 = arith.addf %49, %5 : vector<32x32xf32>
    %c1_i32 = arith.constant 1 : i32
    %51 = arith.truncf %50 : vector<32x32xf32> to vector<32x32xbf16>
    %cst_26 = arith.constant dense<0.000000e+00> : vector<32x32xf32>
    %52 = tpu.matmul %2, %51, %cst_26 {dimension_numbers = #tpu.dot_dimension_numbers<[1], [0], [0], [1], [0, 0, 1, 1], [], []>} : vector<32x32xbf16>, vector<32x32xbf16>, vector<32x32xf32> -> vector<32x32xf32>
    %cst_27 = arith.constant 1.000000e+00 : f32
    %53 = vector.broadcast %cst_27 : f32 to vector<32x32xf32>
    %54 = arith.mulf %53, %50 : vector<32x32xf32>
    %55 = arith.addf %54, %52 : vector<32x32xf32>
    %56 = arith.truncf %55 : vector<32x32xf32> to vector<32x32xbf16>
    %57 = arith.index_cast %c1_i32 : i32 to index
    %c0_28 = arith.constant 0 : index
    %c0_29 = arith.constant 0 : index
    %58 = vector.load %arg6[%57, %c0_28, %c0_29] : memref<4x32x32xbf16, #tpu.memory_space<vmem>>, vector<1x32x32xbf16>
    %59 = vector.shape_cast %58 : vector<1x32x32xbf16> to vector<32x32xbf16>
    %cst_30 = arith.constant dense<0.000000e+00> : vector<32x32xf32>
    %60 = tpu.matmul %56, %59, %cst_30 {dimension_numbers = #tpu.dot_dimension_numbers<[1], [0], [0], [1], [0, 0, 1, 1], [], []>} : vector<32x32xbf16>, vector<32x32xbf16>, vector<32x32xf32> -> vector<32x32xf32>
    %61 = arith.index_cast %c1_i32 : i32 to index
    %c0_31 = arith.constant 0 : index
    %c0_32 = arith.constant 0 : index
    %62 = vector.load %arg7[%61, %c0_31, %c0_32] : memref<4x1x32xf32, #tpu.memory_space<vmem>>, vector<1x1x32xf32>
    %63 = vector.shape_cast %62 : vector<1x1x32xf32> to vector<1x32xf32>
    %64 = vector.broadcast %63 : vector<1x32xf32> to vector<32x32xf32>
    %65 = arith.addf %60, %64 : vector<32x32xf32>
    %cst_33 = arith.constant 0.000000e+00 : f32
    %66 = vector.broadcast %cst_33 : f32 to vector<32x32xf32>
    %67 = arith.maximumf %65, %66 : vector<32x32xf32>
    %68 = arith.truncf %67 : vector<32x32xf32> to vector<32x32xbf16>
    %69 = arith.index_cast %c1_i32 : i32 to index
    %c0_34 = arith.constant 0 : index
    %c0_35 = arith.constant 0 : index
    %70 = vector.load %arg8[%69, %c0_34, %c0_35] : memref<4x32x32xbf16, #tpu.memory_space<vmem>>, vector<1x32x32xbf16>
    %71 = vector.shape_cast %70 : vector<1x32x32xbf16> to vector<32x32xbf16>
    %cst_36 = arith.constant dense<0.000000e+00> : vector<32x32xf32>
    %72 = tpu.matmul %68, %71, %cst_36 {dimension_numbers = #tpu.dot_dimension_numbers<[1], [0], [0], [1], [0, 0, 1, 1], [], []>} : vector<32x32xbf16>, vector<32x32xbf16>, vector<32x32xf32> -> vector<32x32xf32>
    %73 = arith.index_cast %c1_i32 : i32 to index
    %c0_37 = arith.constant 0 : index
    %c0_38 = arith.constant 0 : index
    %74 = vector.load %arg9[%73, %c0_37, %c0_38] : memref<4x1x32xf32, #tpu.memory_space<vmem>>, vector<1x1x32xf32>
    %75 = vector.shape_cast %74 : vector<1x1x32xf32> to vector<1x32xf32>
    %76 = vector.broadcast %75 : vector<1x32xf32> to vector<32x32xf32>
    %77 = arith.addf %72, %76 : vector<32x32xf32>
    %cst_39 = arith.constant 0.000000e+00 : f32
    %78 = vector.broadcast %cst_39 : f32 to vector<32x32xf32>
    %79 = arith.maximumf %77, %78 : vector<32x32xf32>
    %80 = vector.broadcast %6 : vector<32x1xf32> to vector<32x32xf32>
    %81 = arith.mulf %79, %80 : vector<32x32xf32>
    %82 = arith.index_cast %c1_i32 : i32 to index
    %c0_40 = arith.constant 0 : index
    %c0_41 = arith.constant 0 : index
    %83 = vector.load %arg10[%82, %c0_40, %c0_41] : memref<4x1x32xf32, #tpu.memory_space<vmem>>, vector<1x1x32xf32>
    %84 = vector.shape_cast %83 : vector<1x1x32xf32> to vector<1x32xf32>
    %85 = vector.broadcast %84 : vector<1x32xf32> to vector<32x32xf32>
    %86 = arith.mulf %81, %85 : vector<32x32xf32>
    %87 = arith.index_cast %c1_i32 : i32 to index
    %c0_42 = arith.constant 0 : index
    %c0_43 = arith.constant 0 : index
    %88 = vector.load %arg11[%87, %c0_42, %c0_43] : memref<4x1x32xf32, #tpu.memory_space<vmem>>, vector<1x1x32xf32>
    %89 = vector.shape_cast %88 : vector<1x1x32xf32> to vector<1x32xf32>
    %90 = vector.broadcast %89 : vector<1x32xf32> to vector<32x32xf32>
    %91 = arith.addf %86, %90 : vector<32x32xf32>
    %cst_44 = arith.constant 0.000000e+00 : f32
    %92 = vector.broadcast %cst_44 : f32 to vector<32x32xf32>
    %93 = arith.maximumf %91, %92 : vector<32x32xf32>
    %94 = arith.addf %93, %5 : vector<32x32xf32>
    %c2_i32 = arith.constant 2 : i32
    %95 = arith.truncf %94 : vector<32x32xf32> to vector<32x32xbf16>
    %cst_45 = arith.constant dense<0.000000e+00> : vector<32x32xf32>
    %96 = tpu.matmul %2, %95, %cst_45 {dimension_numbers = #tpu.dot_dimension_numbers<[1], [0], [0], [1], [0, 0, 1, 1], [], []>} : vector<32x32xbf16>, vector<32x32xbf16>, vector<32x32xf32> -> vector<32x32xf32>
    %cst_46 = arith.constant 1.000000e+00 : f32
    %97 = vector.broadcast %cst_46 : f32 to vector<32x32xf32>
    %98 = arith.mulf %97, %94 : vector<32x32xf32>
    %99 = arith.addf %98, %96 : vector<32x32xf32>
    %100 = arith.truncf %99 : vector<32x32xf32> to vector<32x32xbf16>
    %101 = arith.index_cast %c2_i32 : i32 to index
    %c0_47 = arith.constant 0 : index
    %c0_48 = arith.constant 0 : index
    %102 = vector.load %arg6[%101, %c0_47, %c0_48] : memref<4x32x32xbf16, #tpu.memory_space<vmem>>, vector<1x32x32xbf16>
    %103 = vector.shape_cast %102 : vector<1x32x32xbf16> to vector<32x32xbf16>
    %cst_49 = arith.constant dense<0.000000e+00> : vector<32x32xf32>
    %104 = tpu.matmul %100, %103, %cst_49 {dimension_numbers = #tpu.dot_dimension_numbers<[1], [0], [0], [1], [0, 0, 1, 1], [], []>} : vector<32x32xbf16>, vector<32x32xbf16>, vector<32x32xf32> -> vector<32x32xf32>
    %105 = arith.index_cast %c2_i32 : i32 to index
    %c0_50 = arith.constant 0 : index
    %c0_51 = arith.constant 0 : index
    %106 = vector.load %arg7[%105, %c0_50, %c0_51] : memref<4x1x32xf32, #tpu.memory_space<vmem>>, vector<1x1x32xf32>
    %107 = vector.shape_cast %106 : vector<1x1x32xf32> to vector<1x32xf32>
    %108 = vector.broadcast %107 : vector<1x32xf32> to vector<32x32xf32>
    %109 = arith.addf %104, %108 : vector<32x32xf32>
    %cst_52 = arith.constant 0.000000e+00 : f32
    %110 = vector.broadcast %cst_52 : f32 to vector<32x32xf32>
    %111 = arith.maximumf %109, %110 : vector<32x32xf32>
    %112 = arith.truncf %111 : vector<32x32xf32> to vector<32x32xbf16>
    %113 = arith.index_cast %c2_i32 : i32 to index
    %c0_53 = arith.constant 0 : index
    %c0_54 = arith.constant 0 : index
    %114 = vector.load %arg8[%113, %c0_53, %c0_54] : memref<4x32x32xbf16, #tpu.memory_space<vmem>>, vector<1x32x32xbf16>
    %115 = vector.shape_cast %114 : vector<1x32x32xbf16> to vector<32x32xbf16>
    %cst_55 = arith.constant dense<0.000000e+00> : vector<32x32xf32>
    %116 = tpu.matmul %112, %115, %cst_55 {dimension_numbers = #tpu.dot_dimension_numbers<[1], [0], [0], [1], [0, 0, 1, 1], [], []>} : vector<32x32xbf16>, vector<32x32xbf16>, vector<32x32xf32> -> vector<32x32xf32>
    %117 = arith.index_cast %c2_i32 : i32 to index
    %c0_56 = arith.constant 0 : index
    %c0_57 = arith.constant 0 : index
    %118 = vector.load %arg9[%117, %c0_56, %c0_57] : memref<4x1x32xf32, #tpu.memory_space<vmem>>, vector<1x1x32xf32>
    %119 = vector.shape_cast %118 : vector<1x1x32xf32> to vector<1x32xf32>
    %120 = vector.broadcast %119 : vector<1x32xf32> to vector<32x32xf32>
    %121 = arith.addf %116, %120 : vector<32x32xf32>
    %cst_58 = arith.constant 0.000000e+00 : f32
    %122 = vector.broadcast %cst_58 : f32 to vector<32x32xf32>
    %123 = arith.maximumf %121, %122 : vector<32x32xf32>
    %124 = vector.broadcast %6 : vector<32x1xf32> to vector<32x32xf32>
    %125 = arith.mulf %123, %124 : vector<32x32xf32>
    %126 = arith.index_cast %c2_i32 : i32 to index
    %c0_59 = arith.constant 0 : index
    %c0_60 = arith.constant 0 : index
    %127 = vector.load %arg10[%126, %c0_59, %c0_60] : memref<4x1x32xf32, #tpu.memory_space<vmem>>, vector<1x1x32xf32>
    %128 = vector.shape_cast %127 : vector<1x1x32xf32> to vector<1x32xf32>
    %129 = vector.broadcast %128 : vector<1x32xf32> to vector<32x32xf32>
    %130 = arith.mulf %125, %129 : vector<32x32xf32>
    %131 = arith.index_cast %c2_i32 : i32 to index
    %c0_61 = arith.constant 0 : index
    %c0_62 = arith.constant 0 : index
    %132 = vector.load %arg11[%131, %c0_61, %c0_62] : memref<4x1x32xf32, #tpu.memory_space<vmem>>, vector<1x1x32xf32>
    %133 = vector.shape_cast %132 : vector<1x1x32xf32> to vector<1x32xf32>
    %134 = vector.broadcast %133 : vector<1x32xf32> to vector<32x32xf32>
    %135 = arith.addf %130, %134 : vector<32x32xf32>
    %cst_63 = arith.constant 0.000000e+00 : f32
    %136 = vector.broadcast %cst_63 : f32 to vector<32x32xf32>
    %137 = arith.maximumf %135, %136 : vector<32x32xf32>
    %138 = arith.addf %137, %5 : vector<32x32xf32>
    %c3_i32 = arith.constant 3 : i32
    %139 = arith.truncf %138 : vector<32x32xf32> to vector<32x32xbf16>
    %cst_64 = arith.constant dense<0.000000e+00> : vector<32x32xf32>
    %140 = tpu.matmul %2, %139, %cst_64 {dimension_numbers = #tpu.dot_dimension_numbers<[1], [0], [0], [1], [0, 0, 1, 1], [], []>} : vector<32x32xbf16>, vector<32x32xbf16>, vector<32x32xf32> -> vector<32x32xf32>
    %cst_65 = arith.constant 1.000000e+00 : f32
    %141 = vector.broadcast %cst_65 : f32 to vector<32x32xf32>
    %142 = arith.mulf %141, %138 : vector<32x32xf32>
    %143 = arith.addf %142, %140 : vector<32x32xf32>
    %144 = arith.truncf %143 : vector<32x32xf32> to vector<32x32xbf16>
    %145 = arith.index_cast %c3_i32 : i32 to index
    %c0_66 = arith.constant 0 : index
    %c0_67 = arith.constant 0 : index
    %146 = vector.load %arg6[%145, %c0_66, %c0_67] : memref<4x32x32xbf16, #tpu.memory_space<vmem>>, vector<1x32x32xbf16>
    %147 = vector.shape_cast %146 : vector<1x32x32xbf16> to vector<32x32xbf16>
    %cst_68 = arith.constant dense<0.000000e+00> : vector<32x32xf32>
    %148 = tpu.matmul %144, %147, %cst_68 {dimension_numbers = #tpu.dot_dimension_numbers<[1], [0], [0], [1], [0, 0, 1, 1], [], []>} : vector<32x32xbf16>, vector<32x32xbf16>, vector<32x32xf32> -> vector<32x32xf32>
    %149 = arith.index_cast %c3_i32 : i32 to index
    %c0_69 = arith.constant 0 : index
    %c0_70 = arith.constant 0 : index
    %150 = vector.load %arg7[%149, %c0_69, %c0_70] : memref<4x1x32xf32, #tpu.memory_space<vmem>>, vector<1x1x32xf32>
    %151 = vector.shape_cast %150 : vector<1x1x32xf32> to vector<1x32xf32>
    %152 = vector.broadcast %151 : vector<1x32xf32> to vector<32x32xf32>
    %153 = arith.addf %148, %152 : vector<32x32xf32>
    %cst_71 = arith.constant 0.000000e+00 : f32
    %154 = vector.broadcast %cst_71 : f32 to vector<32x32xf32>
    %155 = arith.maximumf %153, %154 : vector<32x32xf32>
    %156 = arith.truncf %155 : vector<32x32xf32> to vector<32x32xbf16>
    %157 = arith.index_cast %c3_i32 : i32 to index
    %c0_72 = arith.constant 0 : index
    %c0_73 = arith.constant 0 : index
    %158 = vector.load %arg8[%157, %c0_72, %c0_73] : memref<4x32x32xbf16, #tpu.memory_space<vmem>>, vector<1x32x32xbf16>
    %159 = vector.shape_cast %158 : vector<1x32x32xbf16> to vector<32x32xbf16>
    %cst_74 = arith.constant dense<0.000000e+00> : vector<32x32xf32>
    %160 = tpu.matmul %156, %159, %cst_74 {dimension_numbers = #tpu.dot_dimension_numbers<[1], [0], [0], [1], [0, 0, 1, 1], [], []>} : vector<32x32xbf16>, vector<32x32xbf16>, vector<32x32xf32> -> vector<32x32xf32>
    %161 = arith.index_cast %c3_i32 : i32 to index
    %c0_75 = arith.constant 0 : index
    %c0_76 = arith.constant 0 : index
    %162 = vector.load %arg9[%161, %c0_75, %c0_76] : memref<4x1x32xf32, #tpu.memory_space<vmem>>, vector<1x1x32xf32>
    %163 = vector.shape_cast %162 : vector<1x1x32xf32> to vector<1x32xf32>
    %164 = vector.broadcast %163 : vector<1x32xf32> to vector<32x32xf32>
    %165 = arith.addf %160, %164 : vector<32x32xf32>
    %cst_77 = arith.constant 0.000000e+00 : f32
    %166 = vector.broadcast %cst_77 : f32 to vector<32x32xf32>
    %167 = arith.maximumf %165, %166 : vector<32x32xf32>
    %168 = vector.broadcast %6 : vector<32x1xf32> to vector<32x32xf32>
    %169 = arith.mulf %167, %168 : vector<32x32xf32>
    %170 = arith.index_cast %c3_i32 : i32 to index
    %c0_78 = arith.constant 0 : index
    %c0_79 = arith.constant 0 : index
    %171 = vector.load %arg10[%170, %c0_78, %c0_79] : memref<4x1x32xf32, #tpu.memory_space<vmem>>, vector<1x1x32xf32>
    %172 = vector.shape_cast %171 : vector<1x1x32xf32> to vector<1x32xf32>
    %173 = vector.broadcast %172 : vector<1x32xf32> to vector<32x32xf32>
    %174 = arith.mulf %169, %173 : vector<32x32xf32>
    %175 = arith.index_cast %c3_i32 : i32 to index
    %c0_80 = arith.constant 0 : index
    %c0_81 = arith.constant 0 : index
    %176 = vector.load %arg11[%175, %c0_80, %c0_81] : memref<4x1x32xf32, #tpu.memory_space<vmem>>, vector<1x1x32xf32>
    %177 = vector.shape_cast %176 : vector<1x1x32xf32> to vector<1x32xf32>
    %178 = vector.broadcast %177 : vector<1x32xf32> to vector<32x32xf32>
    %179 = arith.addf %174, %178 : vector<32x32xf32>
    %cst_82 = arith.constant 0.000000e+00 : f32
    %180 = vector.broadcast %cst_82 : f32 to vector<32x32xf32>
    %181 = arith.maximumf %179, %180 : vector<32x32xf32>
    %182 = arith.addf %181, %5 : vector<32x32xf32>
    %c4_i32 = arith.constant 4 : i32
    %c0_83 = arith.constant 0 : index
    %c0_84 = arith.constant 0 : index
    %183 = vector.load %arg4[%c0_83, %c0_84] : memref<2x32xf32, #tpu.memory_space<vmem>>, vector<2x32xf32>
    %cst_85 = arith.constant dense<0.000000e+00> : vector<2x32xf32>
    %184 = tpu.matmul %183, %182, %cst_85 {dimension_numbers = #tpu.dot_dimension_numbers<[1], [0], [0], [1], [0, 0, 1, 1], [], []>} : vector<2x32xf32>, vector<32x32xf32>, vector<2x32xf32> -> vector<2x32xf32>
    %c0_86 = arith.constant 0 : index
    %c0_87 = arith.constant 0 : index
    %185 = vector.load %arg12[%c0_86, %c0_87] : memref<32x32xf32, #tpu.memory_space<vmem>>, vector<32x32xf32>
    %cst_88 = arith.constant dense<0.000000e+00> : vector<2x32xf32>
    %186 = tpu.matmul %184, %185, %cst_88 {dimension_numbers = #tpu.dot_dimension_numbers<[1], [0], [0], [1], [0, 0, 1, 1], [], []>} : vector<2x32xf32>, vector<32x32xf32>, vector<2x32xf32> -> vector<2x32xf32>
    %c0_89 = arith.constant 0 : index
    %c0_90 = arith.constant 0 : index
    %187 = vector.load %arg13[%c0_89, %c0_90] : memref<32x1xf32, #tpu.memory_space<vmem>>, vector<32x1xf32>
    %cst_91 = arith.constant dense<0.000000e+00> : vector<2x1xf32>
    %188 = tpu.matmul %186, %187, %cst_91 {dimension_numbers = #tpu.dot_dimension_numbers<[1], [0], [0], [1], [0, 0, 1, 1], [], []>} : vector<2x32xf32>, vector<32x1xf32>, vector<2x1xf32> -> vector<2x1xf32>
    %c0_92 = arith.constant 0 : index
    %c0_93 = arith.constant 0 : index
    %189 = vector.load %arg14[%c0_92, %c0_93] : memref<1x1xf32, #tpu.memory_space<vmem>>, vector<1x1xf32>
    %190 = vector.broadcast %189 : vector<1x1xf32> to vector<2x1xf32>
    %191 = arith.addf %188, %190 : vector<2x1xf32>
    %c0_94 = arith.constant 0 : index
    %c0_95 = arith.constant 0 : index
    %192 = vector.load %arg15[%c0_94, %c0_95] : memref<2x1xf32, #tpu.memory_space<vmem>>, vector<2x1xf32>
    tpu.vector_store %arg15[%c0_94, %c0_95], %191 {strides = array<i32>} : memref<2x1xf32, #tpu.memory_space<vmem>>, vector<2x1xf32>,
    return
  }
  func.func @transform_0(%arg0: i32) -> (i32, i32) {
    %c0_i32 = arith.constant 0 : i32
    %c0_i32_0 = arith.constant 0 : i32
    %c0_i32_1 = arith.constant 0 : i32
    return %c0_i32, %c0_i32_0 : i32, i32
  }
  func.func @transform_1(%arg0: i32) -> (i32, i32) {
    %c0_i32 = arith.constant 0 : i32
    %c0_i32_0 = arith.constant 0 : i32
    %c0_i32_1 = arith.constant 0 : i32
    return %c0_i32, %c0_i32_0 : i32, i32
  }
  func.func @transform_2(%arg0: i32) -> (i32, i32) {
    %c0_i32 = arith.constant 0 : i32
    %c0_i32_0 = arith.constant 0 : i32
    %c0_i32_1 = arith.constant 0 : i32
    return %c0_i32, %c0_i32_0 : i32, i32
  }
  func.func @transform_3(%arg0: i32) -> (i32, i32) {
    %c0_i32 = arith.constant 0 : i32
    %c0_i32_0 = arith.constant 0 : i32
    %c0_i32_1 = arith.constant 0 : i32
    return %c0_i32, %c0_i32_0 : i32, i32
  }
  func.func @transform_4(%arg0: i32) -> (i32, i32) {
    %c0_i32 = arith.constant 0 : i32
    %c0_i32_0 = arith.constant 0 : i32
    %c0_i32_1 = arith.constant 0 : i32
    return %c0_i32, %c0_i32_0 : i32, i32
  }
  func.func @transform_5(%arg0: i32) -> (i32, i32, i32) {
    %c0_i32 = arith.constant 0 : i32
    %c0_i32_0 = arith.constant 0 : i32
    %c0_i32_1 = arith.constant 0 : i32
    %c0_i32_2 = arith.constant 0 : i32
    return %c0_i32, %c0_i32_0, %c0_i32_1 : i32, i32, i32
  }
  func.func @transform_6(%arg0: i32) -> (i32, i32, i32) {
    %c0_i32 = arith.constant 0 : i32
    %c0_i32_0 = arith.constant 0 : i32
    %c0_i32_1 = arith.constant 0 : i32
    %c0_i32_2 = arith.constant 0 : i32
    return %c0_i32, %c0_i32_0, %c0_i32_1 : i32, i32, i32
  }
  func.func @transform_7(%arg0: i32) -> (i32, i32, i32) {
    %c0_i32 = arith.constant 0 : i32
    %c0_i32_0 = arith.constant 0 : i32
    %c0_i32_1 = arith.constant 0 : i32
    %c0_i32_2 = arith.constant 0 : i32
    return %c0_i32, %c0_i32_0, %c0_i32_1 : i32, i32, i32
  }
  func.func @transform_8(%arg0: i32) -> (i32, i32, i32) {
    %c0_i32 = arith.constant 0 : i32
    %c0_i32_0 = arith.constant 0 : i32
    %c0_i32_1 = arith.constant 0 : i32
    %c0_i32_2 = arith.constant 0 : i32
    return %c0_i32, %c0_i32_0, %c0_i32_1 : i32, i32, i32
  }
  func.func @transform_9(%arg0: i32) -> (i32, i32, i32) {
    %c0_i32 = arith.constant 0 : i32
    %c0_i32_0 = arith.constant 0 : i32
    %c0_i32_1 = arith.constant 0 : i32
    %c0_i32_2 = arith.constant 0 : i32
    return %c0_i32, %c0_i32_0, %c0_i32_1 : i32, i32, i32
  }
  func.func @transform_10(%arg0: i32) -> (i32, i32, i32) {
    %c0_i32 = arith.constant 0 : i32
    %c0_i32_0 = arith.constant 0 : i32
    %c0_i32_1 = arith.constant 0 : i32
    %c0_i32_2 = arith.constant 0 : i32
    return %c0_i32, %c0_i32_0, %c0_i32_1 : i32, i32, i32
  }
  func.func @transform_11(%arg0: i32) -> (i32, i32) {
    %c0_i32 = arith.constant 0 : i32
    %c0_i32_0 = arith.constant 0 : i32
    %c0_i32_1 = arith.constant 0 : i32
    return %c0_i32, %c0_i32_0 : i32, i32
  }
  func.func @transform_12(%arg0: i32) -> (i32, i32) {
    %c0_i32 = arith.constant 0 : i32
    %c0_i32_0 = arith.constant 0 : i32
    %c0_i32_1 = arith.constant 0 : i32
    return %c0_i32, %c0_i32_0 : i32, i32
  }
  func.func @transform_13(%arg0: i32) -> (i32, i32) {
    %c0_i32 = arith.constant 0 : i32
    %c0_i32_0 = arith.constant 0 : i32
    %c0_i32_1 = arith.constant 0 : i32
    return %c0_i32, %c0_i32_0 : i32, i32
  }
  func.func @transform_14(%arg0: i32) -> (i32, i32) {
    %c0_i32 = arith.constant 0 : i32
    %c0_i32_0 = arith.constant 0 : i32
    %c0_i32_1 = arith.constant 0 : i32
    return %c0_i32, %c0_i32_0 : i32, i32
  }
}

</mosaic_0001>

<bundles_post_ra>
// kernel: tpu_custom_call.1
= control target key start
LH: loop header
LB: loop body
LE: loop exit
PB: predicated region body
PF: predicated region fallthrough
CT: control target
= control target key end

     0   :  { %s2206_s0 = inlined_call_operand.vmem [shape: s8[32,32], index: 0, kind: input, shape index: {}]   ;;  %s2207_s1 = inlined_call_operand.vmem [shape: bf16[32,16], index: 1, kind: input, shape index: {}]   ;;  %s2208_s2 = inlined_call_operand.vmem [shape: f32[32,1], index: 2, kind: input, shape index: {}]   ;;  %s2209_s3 = inlined_call_operand.hbm [shape: f32[2,32], index: 3, kind: input, shape index: {}]   ;;  %s2210_s4 = inlined_call_operand.vmem [shape: bf16[16,32], index: 4, kind: input, shape index: {}]   ;;  %s2211_s5 = inlined_call_operand.vmem [shape: bf16[4,32,32], index: 5, kind: input, shape index: {}]   ;;  %s2212_s6 = inlined_call_operand.vmem [shape: f32[4,1,32], index: 6, kind: input, shape index: {}]   ;;  %s2213_s7 = inlined_call_operand.hbm [shape: bf16[4,32,32], index: 7, kind: input, shape index: {}]   ;;  %s2214_s8 = inlined_call_operand.vmem [shape: f32[4,1,32], index: 8, kind: input, shape index: {}]   ;;  %s2215_s9 = inlined_call_operand.vmem [shape: f32[4,1,32], index: 9, kind: input, shape index: {}]   ;;  %s2216_s10 = inlined_call_operand.vmem [shape: f32[4,1,32], index: 10, kind: input, shape index: {}]   ;;  %s2217_s11 = inlined_call_operand.vmem [shape: f32[32,32], index: 11, kind: input, shape index: {}]   ;;  %s2218_s12 = inlined_call_operand.vmem [shape: f32[32,1], index: 12, kind: input, shape index: {}]   ;;  %s2219_s13 = inlined_call_operand.<no memory space> [shape: f32[1,1], index: 13, kind: input, shape index: {}]   ;;  %s2220_s14 = inlined_call_operand.vmem [shape: f32[2,1], index: 14, kind: output, shape index: {}]  }
   0x1   :  { %v19_v0 = vstv %s2219_s13 }
   0x2   :  { %20 = vst [vmem:[#allocation2] sm:$0x1] %v19_v0 }
   0x3   :  { %21 = vsyncpa [#allocation4], 0 }
   0x4   :  { %22 = vsyncpa [#allocation6], 0  ;;  %s1862_s15 = smov [#allocation3]   ;;  %s1863_s17 = smov [#allocation5]  }
   0x5   :  { %s35_s16 = sshll.u32 %s1862_s15, 4  ;;  %s50_s18 = sshll.u32 %s1863_s17, 4  ;;  %s36_s16 = int_to_ptr.vmem [resolvable:$true] %s35_s16  ;;  %s1948_s18 = int_to_ptr.vmem [resolvable:$true] %s50_s18 }
   0x6   :  { %s1814_s21 = scalar_lea.hbm %s2209_s3, 32 }
   0x7   :  { %p1815_p0 = scmp.ne.s32.totalorder %s2209_s3, %s1814_s21  ;;  %p1818_p1 = scmp.lt.u32.totalorder %s1814_s21, %s2209_s3 }
   0x9   :  { %p1820_p2 = pnand %p1818_p1, %p1815_p0 }
   0xb   :  { %1823 = shalt.err (!%p1820_p2)
}
   0xc   :  { %s1824_s25 = scalar_lea.vmem %s36_s16, 32  ;;  %p1829_p4 = scmp.lt.s32.totalorder %s36_s16, %s36_s16 }
   0xd   :  { %p1825_p3 = scmp.ne.s32.totalorder %s36_s16, %s1824_s25  ;;  %p1830_p5 = scmp.lt.s32.totalorder %s1824_s25, %s1824_s25 }
   0xf   :  { %p1831_p6 = por %p1830_p5, %p1829_p4 }
  0x11   :  { %p1832_p7 = pnand %p1831_p6, %p1825_p3 }
  0x13   :  { %1835 = shalt.err (!%p1832_p7)
}
  0x14   :  { %38 = dma.hbm_to_vmem [thread:$0]  %s2209_s3, 32, %s36_s16, [#allocation4]  }
  0x15   :  { %s1836_s30 = scalar_lea.hbm %s2213_s7, 1024 }
  0x16   :  { %p1837_p8 = scmp.ne.s32.totalorder %s2213_s7, %s1836_s30  ;;  %p1840_p9 = scmp.lt.u32.totalorder %s1836_s30, %s2213_s7 }
  0x18   :  { %p1842_p10 = pnand %p1840_p9, %p1837_p8 }
  0x1a   :  { %1845 = shalt.err (!%p1842_p10)
}
  0x1b   :  { %s1846_s21 = scalar_lea.vmem %s1948_s18, 1024  ;;  %p1851_p12 = scmp.lt.s32.totalorder %s1948_s18, %s1948_s18 }
  0x1c   :  { %p1847_p11 = scmp.ne.s32.totalorder %s1948_s18, %s1846_s21  ;;  %p1852_p13 = scmp.lt.s32.totalorder %s1846_s21, %s1846_s21 }
  0x1e   :  { %p1853_p0 = por %p1852_p13, %p1851_p12 }
  0x20   :  { %p1854_p1 = pnand %p1853_p0, %p1847_p11 }
  0x22   :  { %1857 = shalt.err (!%p1854_p1)
}
  0x23   :  { %s1864_s3 = smov 64   ;;  %s1865_s16 = smov 4  }
  0x24   :  { %56 = dma.hbm_to_vmem [thread:$0]  %s2213_s7, 1024, %s1948_s18, [#allocation6], %s1864_s3, %s1864_s3, %s1865_s16  }
  0x25   :  { %1858 = dma.done.wait [#allocation4], 32  }
  0x26   :  { %1859 = vsyncadd [#allocation4], 4294967264 }
  0x27   :  { %1860 = dma.done.wait [#allocation6], 1024  }
  0x28   :  { %1861 = vsyncadd [#allocation6], 4294966272  ;;  %v1795_v1 = vld [vmem:[%s2210_s4] sm:$0xff]   ;;  %vm101_vm0 = vcmask 130048   ;;  %v1797_v3 = vld [vmem:[%s2207_s1 + $0x8] sm:$0xff]   ;;  %vm163_vm1 = vcmask 261120  }
  0x29   :  { %v1796_v2 = vld [vmem:[%s2207_s1] sm:$0xff]   ;;  %1632 = vmatprep.subr.bf16.mxu0 %v1795_v1  ;;  %v1799_v14 = vld [vmem:[%s2211_s5 + $0x8] sm:$0xff]   ;;  %v159_v28 = vld [vmem:[%s2208_s2 + $0x10] sm:$0xff]  ;;  %v1866_v29 = vmov 0   ;;  %vm1868_vm2 = vmmov 0   ;;  %vm1469_vm3 = vcmask 1024  }
  0x2a   :  { %1633 = vmatpush3.bf16.msra.mxu0 %v1795_v1  ;;  %1634 = vmatprep.mubr.msk.bf16.mxu0 %vm101_vm0, %v1796_v2  ;;  %v76_v4 = vld [vmem:[%s2206_s0] sm:$0xff]  ;;  %v1801_v26 = vld [vmem:[#allocation5 + $0x8] sm:$0xff]   ;;  %v160_v31 = vld [vmem:[%s2208_s2 + $0x18] sm:$0xff] }
  0x2b   :  { %v1991_v5 = vunpack.c.l.s8.bf16 %v76_v4  ;;  %v2007_v12 = vunpack.c.h.s8.bf16 %v76_v4  ;;  %v1798_v13 = vld [vmem:[%s2211_s5] sm:$0xff]   ;;  %1793 = vset.pattern.permute.xlu0 %v1866_v29  ;;  %1794 = vset.pattern.permute.xlu1 %v1866_v29  ;;  %v158_v30 = vld [vmem:[%s2208_s2 + $0x8] sm:$0xff] }
  0x2c   :  { %1646 = vmatprep.subr.bf16.mxu0 %v1798_v13  ;;  %v1800_v25 = vld [vmem:[#allocation5] sm:$0xff]   ;;  %403 = vperm.xlu1 %1794, %v159_v28   ;;  %v1484_v32 = vld [vmem:[%s2212_s6] ss:$0 sm:$0xff] }
  0x2d   :  { %1635 = vmatmul.mubr.msk.bf16.vlgmr.msra.gmra.mrb[0].mxu0 %vm101_vm0, %v1797_v3  ;;  %1642 = vmatprep.mubr.msk.bf16.mxu1 %vm163_vm1, %v1991_v5  ;;  %v157_v27 = vld [vmem:[%s2208_s2] sm:$0xff] }
  0x2e   :  { %1647 = vmatpush3.bf16.msra.mxu0 %v1798_v13  ;;  %393 = vperm.xlu0 %1793, %v157_v27   ;;  %v1489_v47 = vld [vmem:[%s2214_s8] ss:$0 sm:$0xff] }
  0x2f   :  { %1648 = vmatprep.subr.bf16.mxu0 %v1799_v14  ;;  %v1494_v59 = vld [vmem:[%s2215_s9] ss:$0 sm:$0xff] }
  0x30   :  { %408 = vperm.xlu1 %1794, %v160_v31   ;;  %v1495_v1 = vld [vmem:[%s2216_s10] ss:$0 sm:$0xff]  ;;  %v1803_v31 = vld [vmem:[%s2211_s5 + $0x18] sm:$0xff]  }
  0x32   :  { %1649 = vmatpush3.bf16.msra.mxu0 %v1799_v14  ;;  %398 = vperm.xlu0 %1793, %v158_v30   ;;  %v1802_v30 = vld [vmem:[%s2211_s5 + $0x10] sm:$0xff]  }
  0xab   :  { %v2045_v48 = vpop.permute.xlu1 %403 }
  0xad   :  { %v2047_v50 = vpop.permute.xlu0 %393 }
  0xaf   :  { %v2052_v61 = vpop.permute.xlu1 %408 }
  0xb1   :  { %v2059_v4 = vpop.permute.xlu0 %398 }
 0x100   :  { %v1995_v6 = vpop.f32.mrb[0].mxu0 }
 0x101   :  { %v1997_v7 = vpop.f32.mrb[1].mxu0 }
 0x102   :  { %v1999_v8 = vpop.f32.mrb[2].mxu0 }
 0x103   :  { %v2001_v9 = vpop.f32.mrb[3].mxu0  ;;  %v162_v10 = vpack.c.bf16 %v1999_v8, %v1995_v6 }
 0x104   :  { %v161_v11 = vpack.c.bf16 %v2001_v9, %v1997_v7 }
 0x106   :  { %1638 = vmatprep.subr.bf16.mxu1 %v161_v11 }
 0x107   :  { %1639 = vmatpush3.bf16.msra.mxu1 %v161_v11 }
 0x108   :  { %1640 = vmatprep.subr.bf16.mxu1 %v162_v10 }
 0x10b   :  { %1641 = vmatpush3.bf16.msra.mxu1 %v162_v10 }
 0x10c   :  { %1654 = vmatprep.subr.bf16.mxu1 %v1800_v25 }
 0x10e   :  { %1643 = vmatmul.mubr.msk.bf16.vlgmr.msra.gmra.mrb[0].mxu1 %vm163_vm1, %v2007_v12 }
 0x10f   :  { %1655 = vmatpush3.bf16.msra.mxu1 %v1800_v25 }
 0x110   :  { %1656 = vmatprep.subr.bf16.mxu1 %v1801_v26 }
 0x113   :  { %1657 = vmatpush3.bf16.msra.mxu1 %v1801_v26 }
 0x114   :  { %1670 = vmatprep.subr.bf16.mxu1 %v1802_v30 }
 0x1e1   :  { %v1644_v15 = vpop.f32.mrb[0].mxu1 }
 0x1e2   :  { %v221_v16 = vadd.f32 %v1644_v15, %v1995_v6  ;;  %v204_v17 = vpop.f32.mrb[1].mxu1 }
 0x1e3   :  { %v219_v18 = vadd.f32 %v204_v17, %v1997_v7  ;;  %v1645_v19 = vpop.f32.mrb[2].mxu1 }
 0x1e4   :  { %v222_v20 = vadd.f32 %v1645_v19, %v1999_v8  ;;  %v207_v21 = vpop.f32.mrb[3].mxu1 }
 0x1e5   :  { %v220_v22 = vadd.f32 %v207_v21, %v2001_v9 }
 0x1e6   :  { %v224_v23 = vpack.c.bf16 %v222_v20, %v221_v16 }
 0x1e7   :  { %v223_v24 = vpack.c.bf16 %v220_v22, %v219_v18 }
 0x1e9   :  { %1650 = vmatprep.mubr.msk.bf16.mxu0 %vm163_vm1, %v223_v24 }
 0x1ea   :  { %1651 = vmatmul.mubr.msk.bf16.vlgmr.msra.gmra.mrb[4].mxu0 %vm163_vm1, %v224_v23 }
 0x1eb   :  { %1666 = vmatprep.mubr.msk.bf16.mxu0 %vm163_vm1, %v1991_v5 }
 0x2bd   :  { %v1652_v33 = vpop.f32.mrb[4].mxu0 }
 0x2be   :  { %v297_v34 = vadd.f32 %v1652_v33, %v1484_v32  ;;  %v288_v35 = vpop.f32.mrb[5].mxu0 }
 0x2bf   :  { %v289_v36 = vadd.f32 %v1484_v32, %v288_v35  ;;  %v1653_v37 = vpop.f32.mrb[6].mxu0 }
 0x2c0   :  { %v300_v38 = vadd.f32 %v1653_v37, %v1484_v32  ;;  %v291_v39 = vpop.f32.mrb[7].mxu0  ;;  %v305_v41 = vmax.f32 %v297_v34, 0.0 }
 0x2c1   :  { %v292_v40 = vadd.f32 %v1484_v32, %v291_v39  ;;  %v303_v43 = vmax.f32 %v289_v36, 0.0 }
 0x2c2   :  { %v306_v42 = vmax.f32 %v300_v38, 0.0 }
 0x2c3   :  { %v304_v44 = vmax.f32 %v292_v40, 0.0 }
 0x2c4   :  { %v308_v45 = vpack.c.bf16 %v306_v42, %v305_v41  ;;  %v1804_v42 = vld [vmem:[#allocation5 + $0x10] sm:$0xff]  }
 0x2c5   :  { %v307_v46 = vpack.c.bf16 %v304_v44, %v303_v43  ;;  %v1805_v43 = vld [vmem:[#allocation5 + $0x18] sm:$0xff]  }
 0x2c6   :  { %v1503_v44 = vld [vmem:[%s2212_s6 + $0x1] ss:$0 sm:$0xff] }
 0x2c7   :  { %1658 = vmatprep.mubr.msk.bf16.mxu1 %vm163_vm1, %v307_v46 }
 0x2c8   :  { %1659 = vmatmul.mubr.msk.bf16.vlgmr.msra.gmra.mrb[4].mxu1 %vm163_vm1, %v308_v45 }
 0x2c9   :  { %1671 = vmatpush3.bf16.msra.mxu1 %v1802_v30 }
 0x2ca   :  { %1672 = vmatprep.subr.bf16.mxu1 %v1803_v31 }
 0x2cd   :  { %1673 = vmatpush3.bf16.msra.mxu1 %v1803_v31 }
 0x39b   :  { %v1660_v49 = vpop.f32.mrb[4].mxu1 }
 0x39c   :  { %v381_v51 = vadd.f32 %v1660_v49, %v1489_v47  ;;  %v372_v52 = vpop.f32.mrb[5].mxu1 }
 0x39d   :  { %v373_v53 = vadd.f32 %v1489_v47, %v372_v52  ;;  %v1661_v54 = vpop.f32.mrb[6].mxu1 }
 0x39e   :  { %v389_v55 = vmax.f32 %v381_v51, 0.0  ;;  %v384_v56 = vadd.f32 %v1661_v54, %v1489_v47  ;;  %v375_v57 = vpop.f32.mrb[7].mxu1 }
 0x39f   :  { %v387_v58 = vmax.f32 %v373_v53, 0.0  ;;  %v376_v60 = vadd.f32 %v1489_v47, %v375_v57 }
 0x3a0   :  { %v413_v62 = vmul.f32 %v2045_v48, %v389_v55  ;;  %v390_v63 = vmax.f32 %v384_v56, 0.0 }
 0x3a1   :  { %v411_v0 = vmul.f32 %v2047_v50, %v387_v58  ;;  %v388_v2 = vmax.f32 %v376_v60, 0.0 }
 0x3a2   :  { %v424_v3 = vmul.f32 %v1494_v59, %v413_v62  ;;  %v414_v10 = vmul.f32 %v2052_v61, %v390_v63  ;;  %v1509_v62 = vld [vmem:[%s2214_s8 + $0x1] ss:$0 sm:$0xff] }
 0x3a3   :  { %v422_v11 = vmul.f32 %v1494_v59, %v411_v0  ;;  %v412_v13 = vmul.f32 %v2059_v4, %v388_v2 }
 0x3a4   :  { %v425_v14 = vmul.f32 %v1494_v59, %v414_v10  ;;  %v435_v15 = vadd.f32 %v1495_v1, %v424_v3 }
 0x3a5   :  { %v433_v16 = vadd.f32 %v1495_v1, %v422_v11  ;;  %v423_v17 = vmul.f32 %v1494_v59, %v412_v13 }
 0x3a6   :  { %v436_v18 = vadd.f32 %v1495_v1, %v425_v14  ;;  %v439_v19 = vmax.f32 %v435_v15, 0.0  ;;  %v1515_v14 = vld [vmem:[%s2215_s9 + $0x1] ss:$0 sm:$0xff] }
 0x3a7   :  { %v437_v20 = vmax.f32 %v433_v16, 0.0  ;;  %v434_v21 = vadd.f32 %v1495_v1, %v423_v17 }
 0x3a8   :  { %v440_v22 = vmax.f32 %v436_v18, 0.0  ;;  %v443_v23 = vadd.f32 %v1995_v6, %v439_v19  ;;  %v1517_v19 = vld [vmem:[%s2216_s10 + $0x1] ss:$0 sm:$0xff] }
 0x3a9   :  { %v438_v24 = vmax.f32 %v434_v21, 0.0  ;;  %v441_v25 = vadd.f32 %v437_v20, %v1997_v7 }
 0x3aa   :  { %v444_v26 = vadd.f32 %v1999_v8, %v440_v22 }
 0x3ab   :  { %v442_v27 = vadd.f32 %v438_v24, %v2001_v9 }
 0x3ac   :  { %v446_v29 = vpack.c.bf16 %v444_v26, %v443_v23 }
 0x3ad   :  { %v445_v28 = vpack.c.bf16 %v442_v27, %v441_v25 }
 0x3af   :  { %1662 = vmatprep.subr.bf16.mxu0 %v445_v28 }
 0x3b0   :  { %1663 = vmatpush3.bf16.msra.mxu0 %v445_v28 }
 0x3b1   :  { %1664 = vmatprep.subr.bf16.mxu0 %v446_v29 }
 0x3b4   :  { %1665 = vmatpush3.bf16.msra.mxu0 %v446_v29 }
 0x3b5   :  { %1678 = vmatprep.subr.bf16.mxu0 %v1804_v42 }
 0x3b7   :  { %1667 = vmatmul.mubr.msk.bf16.vlgmr.msra.gmra.mrb[8].mxu0 %vm163_vm1, %v2007_v12 }
 0x3b8   :  { %1679 = vmatpush3.bf16.msra.mxu0 %v1804_v42  ;;  %v1806_v42 = vld [vmem:[%s2211_s5 + $0x20] sm:$0xff]  }
 0x3b9   :  { %1680 = vmatprep.subr.bf16.mxu0 %v1805_v43 }
 0x3bc   :  { %1681 = vmatpush3.bf16.msra.mxu0 %v1805_v43  ;;  %v1807_v43 = vld [vmem:[%s2211_s5 + $0x28] sm:$0xff]  }
 0x3bd   :  { %1694 = vmatprep.subr.bf16.mxu0 %v1806_v42 }
 0x48a   :  { %v1668_v32 = vpop.f32.mrb[8].mxu0 }
 0x48b   :  { %v481_v33 = vpop.f32.mrb[9].mxu0  ;;  %v498_v35 = vadd.f32 %v1668_v32, %v443_v23 }
 0x48c   :  { %v1669_v34 = vpop.f32.mrb[10].mxu0  ;;  %v496_v38 = vadd.f32 %v481_v33, %v441_v25 }
 0x48d   :  { %v499_v36 = vadd.f32 %v1669_v34, %v444_v26  ;;  %v484_v37 = vpop.f32.mrb[11].mxu0 }
 0x48e   :  { %v497_v39 = vadd.f32 %v484_v37, %v442_v27 }
 0x48f   :  { %v501_v40 = vpack.c.bf16 %v499_v36, %v498_v35 }
 0x490   :  { %v500_v41 = vpack.c.bf16 %v497_v39, %v496_v38 }
 0x492   :  { %1674 = vmatprep.mubr.msk.bf16.mxu1 %vm163_vm1, %v500_v41 }
 0x493   :  { %1675 = vmatmul.mubr.msk.bf16.vlgmr.msra.gmra.mrb[8].mxu1 %vm163_vm1, %v501_v40 }
 0x494   :  { %1690 = vmatprep.mubr.msk.bf16.mxu1 %vm163_vm1, %v1991_v5 }
 0x566   :  { %v1676_v45 = vpop.f32.mrb[8].mxu1 }
 0x567   :  { %v576_v46 = vadd.f32 %v1676_v45, %v1503_v44  ;;  %v567_v47 = vpop.f32.mrb[9].mxu1 }
 0x568   :  { %v568_v49 = vadd.f32 %v1503_v44, %v567_v47  ;;  %v1677_v51 = vpop.f32.mrb[10].mxu1 }
 0x569   :  { %v579_v52 = vadd.f32 %v1677_v51, %v1503_v44  ;;  %v570_v53 = vpop.f32.mrb[11].mxu1  ;;  %v584_v55 = vmax.f32 %v576_v46, 0.0 }
 0x56a   :  { %v571_v54 = vadd.f32 %v1503_v44, %v570_v53  ;;  %v582_v57 = vmax.f32 %v568_v49, 0.0 }
 0x56b   :  { %v585_v56 = vmax.f32 %v579_v52, 0.0 }
 0x56c   :  { %v583_v58 = vmax.f32 %v571_v54, 0.0 }
 0x56d   :  { %v587_v59 = vpack.c.bf16 %v585_v56, %v584_v55  ;;  %v1808_v56 = vld [vmem:[#allocation5 + $0x20] sm:$0xff]  }
 0x56e   :  { %v586_v60 = vpack.c.bf16 %v583_v58, %v582_v57  ;;  %v1809_v57 = vld [vmem:[#allocation5 + $0x28] sm:$0xff]   ;;  %v1525_v58 = vld [vmem:[%s2212_s6 + $0x2] ss:$0 sm:$0xff] }
 0x570   :  { %1682 = vmatprep.mubr.msk.bf16.mxu0 %vm163_vm1, %v586_v60 }
 0x571   :  { %1683 = vmatmul.mubr.msk.bf16.vlgmr.msra.gmra.mrb[12].mxu0 %vm163_vm1, %v587_v59 }
 0x572   :  { %1695 = vmatpush3.bf16.msra.mxu0 %v1806_v42 }
 0x573   :  { %1696 = vmatprep.subr.bf16.mxu0 %v1807_v43 }
 0x576   :  { %1697 = vmatpush3.bf16.msra.mxu0 %v1807_v43 }
 0x644   :  { %v1684_v63 = vpop.f32.mrb[12].mxu0 }
 0x645   :  { %v662_v0 = vadd.f32 %v1684_v63, %v1509_v62  ;;  %v653_v1 = vpop.f32.mrb[13].mxu0 }
 0x646   :  { %v654_v2 = vadd.f32 %v1509_v62, %v653_v1  ;;  %v1685_v3 = vpop.f32.mrb[14].mxu0 }
 0x647   :  { %v670_v10 = vmax.f32 %v662_v0, 0.0  ;;  %v665_v11 = vadd.f32 %v1685_v3, %v1509_v62  ;;  %v656_v13 = vpop.f32.mrb[15].mxu0 }
 0x648   :  { %v668_v15 = vmax.f32 %v654_v2, 0.0  ;;  %v657_v16 = vadd.f32 %v1509_v62, %v656_v13 }
 0x649   :  { %v674_v17 = vmul.f32 %v670_v10, %v2045_v48  ;;  %v671_v18 = vmax.f32 %v665_v11, 0.0 }
 0x64a   :  { %v672_v20 = vmul.f32 %v668_v15, %v2047_v50  ;;  %v669_v21 = vmax.f32 %v657_v16, 0.0  ;;  %v1531_v16 = vld [vmem:[%s2214_s8 + $0x2] ss:$0 sm:$0xff] }
 0x64b   :  { %v686_v22 = vmul.f32 %v1515_v14, %v674_v17  ;;  %v675_v23 = vmul.f32 %v671_v18, %v2052_v61 }
 0x64c   :  { %v684_v24 = vmul.f32 %v1515_v14, %v672_v20  ;;  %v673_v25 = vmul.f32 %v669_v21, %v2059_v4 }
 0x64d   :  { %v698_v26 = vadd.f32 %v1517_v19, %v686_v22  ;;  %v687_v27 = vmul.f32 %v1515_v14, %v675_v23 }
 0x64e   :  { %v696_v28 = vadd.f32 %v1517_v19, %v684_v24  ;;  %v685_v29 = vmul.f32 %v1515_v14, %v673_v25  ;;  %v1537_v25 = vld [vmem:[%s2215_s9 + $0x2] ss:$0 sm:$0xff] }
 0x64f   :  { %v702_v30 = vmax.f32 %v698_v26, 0.0  ;;  %v699_v31 = vadd.f32 %v1517_v19, %v687_v27 }
 0x650   :  { %v700_v32 = vmax.f32 %v696_v28, 0.0  ;;  %v697_v33 = vadd.f32 %v1517_v19, %v685_v29 }
 0x651   :  { %v703_v34 = vmax.f32 %v699_v31, 0.0  ;;  %v706_v35 = vadd.f32 %v1995_v6, %v702_v30  ;;  %v1539_v30 = vld [vmem:[%s2216_s10 + $0x2] ss:$0 sm:$0xff] }
 0x652   :  { %v701_v36 = vmax.f32 %v697_v33, 0.0  ;;  %v704_v37 = vadd.f32 %v700_v32, %v1997_v7 }
 0x653   :  { %v707_v38 = vadd.f32 %v1999_v8, %v703_v34 }
 0x654   :  { %v705_v39 = vadd.f32 %v701_v36, %v2001_v9 }
 0x655   :  { %v709_v41 = vpack.c.bf16 %v707_v38, %v706_v35 }
 0x656   :  { %v708_v40 = vpack.c.bf16 %v705_v39, %v704_v37 }
 0x658   :  { %1686 = vmatprep.subr.bf16.mxu1 %v708_v40 }
 0x659   :  { %1687 = vmatpush3.bf16.msra.mxu1 %v708_v40 }
 0x65a   :  { %1688 = vmatprep.subr.bf16.mxu1 %v709_v41 }
 0x65d   :  { %1689 = vmatpush3.bf16.msra.mxu1 %v709_v41 }
 0x65e   :  { %1702 = vmatprep.subr.bf16.mxu1 %v1808_v56 }
 0x660   :  { %1691 = vmatmul.mubr.msk.bf16.vlgmr.msra.gmra.mrb[12].mxu1 %vm163_vm1, %v2007_v12 }
 0x661   :  { %1703 = vmatpush3.bf16.msra.mxu1 %v1808_v56  ;;  %v1811_v56 = vld [vmem:[%s2211_s5 + $0x38] sm:$0xff]  }
 0x662   :  { %1704 = vmatprep.subr.bf16.mxu1 %v1809_v57 }
 0x665   :  { %1705 = vmatpush3.bf16.msra.mxu1 %v1809_v57 }
 0x733   :  { %v1692_v44 = vpop.f32.mrb[12].mxu1 }
 0x734   :  { %v744_v45 = vpop.f32.mrb[13].mxu1  ;;  %v761_v47 = vadd.f32 %v1692_v44, %v706_v35 }
 0x735   :  { %v1693_v46 = vpop.f32.mrb[14].mxu1  ;;  %v759_v52 = vadd.f32 %v744_v45, %v704_v37 }
 0x736   :  { %v762_v49 = vadd.f32 %v1693_v46, %v707_v38  ;;  %v747_v51 = vpop.f32.mrb[15].mxu1 }
 0x737   :  { %v760_v53 = vadd.f32 %v747_v51, %v705_v39 }
 0x738   :  { %v764_v54 = vpack.c.bf16 %v762_v49, %v761_v47 }
 0x739   :  { %v763_v55 = vpack.c.bf16 %v760_v53, %v759_v52 }
 0x73b   :  { %1698 = vmatprep.mubr.msk.bf16.mxu0 %vm163_vm1, %v763_v55  ;;  %v1810_v55 = vld [vmem:[%s2211_s5 + $0x30] sm:$0xff]  }
 0x73c   :  { %1699 = vmatmul.mubr.msk.bf16.vlgmr.msra.gmra.mrb[16].mxu0 %vm163_vm1, %v764_v54  ;;  %1718 = vmatprep.subr.bf16.mxu1 %v1810_v55 }
 0x73d   :  { %1714 = vmatprep.mubr.msk.bf16.mxu0 %vm163_vm1, %v1991_v5 }
 0x80f   :  { %v1700_v59 = vpop.f32.mrb[16].mxu0 }
 0x810   :  { %v839_v60 = vadd.f32 %v1700_v59, %v1525_v58  ;;  %v830_v62 = vpop.f32.mrb[17].mxu0 }
 0x811   :  { %v831_v63 = vadd.f32 %v1525_v58, %v830_v62  ;;  %v1701_v0 = vpop.f32.mrb[18].mxu0 }
 0x812   :  { %v842_v1 = vadd.f32 %v1701_v0, %v1525_v58  ;;  %v833_v2 = vpop.f32.mrb[19].mxu0  ;;  %v847_v10 = vmax.f32 %v839_v60, 0.0 }
 0x813   :  { %v834_v3 = vadd.f32 %v1525_v58, %v833_v2  ;;  %v845_v11 = vmax.f32 %v831_v63, 0.0 }
 0x814   :  { %v848_v5 = vmax.f32 %v842_v1, 0.0 }
 0x815   :  { %v846_v13 = vmax.f32 %v834_v3, 0.0  ;;  %v1812_v3 = vld [vmem:[#allocation5 + $0x30] sm:$0xff]  }
 0x816   :  { %v850_v14 = vpack.c.bf16 %v848_v5, %v847_v10  ;;  %v1813_v10 = vld [vmem:[#allocation5 + $0x38] sm:$0xff]   ;;  %v1547_v5 = vld [vmem:[%s2212_s6 + $0x3] ss:$0 sm:$0xff] }
 0x817   :  { %v849_v15 = vpack.c.bf16 %v846_v13, %v845_v11 }
 0x819   :  { %1706 = vmatprep.mubr.msk.bf16.mxu1 %vm163_vm1, %v849_v15 }
 0x81a   :  { %1707 = vmatmul.mubr.msk.bf16.vlgmr.msra.gmra.mrb[16].mxu1 %vm163_vm1, %v850_v14 }
 0x81b   :  { %1719 = vmatpush3.bf16.msra.mxu1 %v1810_v55 }
 0x81c   :  { %1720 = vmatprep.subr.bf16.mxu1 %v1811_v56 }
 0x81f   :  { %1721 = vmatpush3.bf16.msra.mxu1 %v1811_v56 }
 0x8ed   :  { %v1708_v17 = vpop.f32.mrb[16].mxu1 }
 0x8ee   :  { %v925_v18 = vadd.f32 %v1708_v17, %v1531_v16  ;;  %v916_v19 = vpop.f32.mrb[17].mxu1 }
 0x8ef   :  { %v917_v20 = vadd.f32 %v1531_v16, %v916_v19  ;;  %v1709_v21 = vpop.f32.mrb[18].mxu1 }
 0x8f0   :  { %v933_v22 = vmax.f32 %v925_v18, 0.0  ;;  %v928_v23 = vadd.f32 %v1709_v21, %v1531_v16  ;;  %v919_v24 = vpop.f32.mrb[19].mxu1 }
 0x8f1   :  { %v931_v26 = vmax.f32 %v917_v20, 0.0  ;;  %v920_v27 = vadd.f32 %v1531_v16, %v919_v24 }
 0x8f2   :  { %v937_v28 = vmul.f32 %v933_v22, %v2045_v48  ;;  %v934_v29 = vmax.f32 %v928_v23, 0.0 }
 0x8f3   :  { %v935_v31 = vmul.f32 %v931_v26, %v2047_v50  ;;  %v932_v32 = vmax.f32 %v920_v27, 0.0  ;;  %v1867_v26 = vmov 0.0|0.0   ;;  %v1869_v27 = vmov 0.0  }
 0x8f4   :  { %v949_v33 = vmul.f32 %v1537_v25, %v937_v28  ;;  %v938_v34 = vmul.f32 %v934_v29, %v2052_v61  ;;  %1767 = vmatprep.subr.bf16.mxu1 %v1867_v26  ;;  %v1308_v28 = vld [vmem:[%s2217_s11] sm:$0xff]  ;;  %v1309_v29 = vld [vmem:[%s2217_s11 + $0x8] sm:$0xff] }
 0x8f5   :  { %v947_v35 = vmul.f32 %v1537_v25, %v935_v31  ;;  %v936_v36 = vmul.f32 %v932_v32, %v2059_v4  ;;  %v1774_v31 = vpack.c.bf16 %v1309_v29, %v1308_v28  ;;  %v1311_v32 = vld [vmem:[%s2217_s11 + $0x18] sm:$0xff] }
 0x8f6   :  { %v961_v37 = vadd.f32 %v1539_v30, %v949_v33  ;;  %v950_v38 = vmul.f32 %v1537_v25, %v938_v34  ;;  %v1553_v34 = vld [vmem:[%s2214_s8 + $0x3] ss:$0 sm:$0xff] }
 0x8f7   :  { %v959_v39 = vadd.f32 %v1539_v30, %v947_v35  ;;  %v948_v40 = vmul.f32 %v1537_v25, %v936_v36 }
 0x8f8   :  { %v965_v41 = vmax.f32 %v961_v37, 0.0  ;;  %v962_v42 = vadd.f32 %v1539_v30, %v950_v38 }
 0x8f9   :  { %v963_v43 = vmax.f32 %v959_v39, 0.0  ;;  %v960_v44 = vadd.f32 %v1539_v30, %v948_v40  ;;  %v1310_v30 = vld [vmem:[%s2217_s11 + $0x10] sm:$0xff] }
 0x8fa   :  { %v966_v45 = vmax.f32 %v962_v42, 0.0  ;;  %v969_v46 = vadd.f32 %v1995_v6, %v965_v41  ;;  %v1777_v33 = vpack.c.bf16 %v1311_v32, %v1310_v30 }
 0x8fb   :  { %v964_v47 = vmax.f32 %v960_v44, 0.0  ;;  %v967_v49 = vadd.f32 %v963_v43, %v1997_v7  ;;  %v1559_v43 = vld [vmem:[%s2215_s9 + $0x3] ss:$0 sm:$0xff] }
 0x8fc   :  { %v970_v51 = vadd.f32 %v1999_v8, %v966_v45 }
 0x8fd   :  { %v968_v52 = vadd.f32 %v964_v47, %v2001_v9 }
 0x8fe   :  { %v972_v54 = vpack.c.bf16 %v970_v51, %v969_v46 }
 0x8ff   :  { %v971_v53 = vpack.c.bf16 %v968_v52, %v967_v49 }
 0x901   :  { %1710 = vmatprep.subr.bf16.mxu0 %v971_v53 }
 0x902   :  { %1711 = vmatpush3.bf16.msra.mxu0 %v971_v53 }
 0x903   :  { %1712 = vmatprep.subr.bf16.mxu0 %v972_v54 }
 0x906   :  { %1713 = vmatpush3.bf16.msra.mxu0 %v972_v54 }
 0x907   :  { %1726 = vmatprep.subr.bf16.mxu0 %v1812_v3 }
 0x909   :  { %1715 = vmatmul.mubr.msk.bf16.vlgmr.msra.gmra.mrb[20].mxu0 %vm163_vm1, %v2007_v12 }
 0x90a   :  { %1727 = vmatpush3.bf16.msra.mxu0 %v1812_v3 }
 0x90b   :  { %1728 = vmatprep.subr.bf16.mxu0 %v1813_v10 }
 0x90e   :  { %1729 = vmatpush3.bf16.msra.mxu0 %v1813_v10 }
 0x90f   :  { %1773 = vmatprep.subr.bf16.mxu0 %v1867_v26 }
 0x9dc   :  { %v1716_v57 = vpop.f32.mrb[20].mxu0 }
 0x9dd   :  { %v1007_v58 = vpop.f32.mrb[21].mxu0  ;;  %v1024_v60 = vadd.f32 %v1716_v57, %v969_v46 }
 0x9de   :  { %v1717_v59 = vpop.f32.mrb[22].mxu0  ;;  %v1022_v0 = vadd.f32 %v1007_v58, %v967_v49  ;;  %v1561_v49 = vld [vmem:[%s2216_s10 + $0x3] ss:$0 sm:$0xff] }
 0x9df   :  { %v1025_v62 = vadd.f32 %v1717_v59, %v970_v51  ;;  %v1010_v63 = vpop.f32.mrb[23].mxu0 }
 0x9e0   :  { %v1023_v12 = vadd.f32 %v1010_v63, %v968_v52 }
 0x9e1   :  { %v1027_v1 = vpack.c.bf16 %v1025_v62, %v1024_v60 }
 0x9e2   :  { %v1026_v2 = vpack.c.bf16 %v1023_v12, %v1022_v0 }
 0x9e4   :  { %1722 = vmatprep.mubr.msk.bf16.mxu1 %vm163_vm1, %v1026_v2 }
 0x9e5   :  { %1723 = vmatmul.mubr.msk.bf16.vlgmr.msra.gmra.mrb[20].mxu1 %vm163_vm1, %v1027_v1 }
 0x9e6   :  { %1742 = vmatprep.mubr.msk.f32.mxu1 %vm1868_vm2, %v1869_v27 }
 0xab8   :  { %v1724_v11 = vpop.f32.mrb[20].mxu1 }
 0xab9   :  { %v1102_v13 = vadd.f32 %v1724_v11, %v1547_v5  ;;  %v1093_v14 = vpop.f32.mrb[21].mxu1  ;;  %v1388_v11 = vld [vmem:[%s2218_s12 + $0x18] sm:$0xff] }
 0xaba   :  { %v1094_v15 = vadd.f32 %v1547_v5, %v1093_v14  ;;  %v1725_v16 = vpop.f32.mrb[22].mxu1 }
 0xabb   :  { %v1105_v17 = vadd.f32 %v1725_v16, %v1547_v5  ;;  %v1096_v18 = vpop.f32.mrb[23].mxu1  ;;  %v1110_v20 = vmax.f32 %v1102_v13, 0.0 }
 0xabc   :  { %v1097_v19 = vadd.f32 %v1547_v5, %v1096_v18  ;;  %v1108_v22 = vmax.f32 %v1094_v15, 0.0  ;;  %v1234_v5 = vld [vmem:[#allocation3] sm:$0x3]  ;;  %v1564_v18 = vld [vmem:[#allocation2] ss:$0 sm:$0xff] }
 0xabd   :  { %v1111_v21 = vmax.f32 %v1105_v17, 0.0 }
 0xabe   :  { %v1109_v23 = vmax.f32 %v1097_v19, 0.0 }
 0xabf   :  { %v1113_v24 = vpack.c.bf16 %v1111_v21, %v1110_v20 }
 0xac0   :  { %v1112_v25 = vpack.c.bf16 %v1109_v23, %v1108_v22 }
 0xac2   :  { %1730 = vmatprep.mubr.msk.bf16.mxu0 %vm163_vm1, %v1112_v25 }
 0xac3   :  { %1731 = vmatmul.mubr.msk.bf16.vlgmr.msra.gmra.mrb[24].mxu0 %vm163_vm1, %v1113_v24 }
 0xac4   :  { %1753 = vmatprep.mubr.msk.f32.mxu0 %vm1868_vm2, %v1869_v27  ;;  %1775 = vmatpush3.bf16.msra.mxu0 %v1774_v31 }
 0xac5   :  { %1776 = vmatprep.subr.bf16.mxu0 %v1867_v26 }
 0xac8   :  { %1778 = vmatpush3.bf16.msra.mxu0 %v1777_v33 }
 0xb96   :  { %v1732_v35 = vpop.f32.mrb[24].mxu0 }
 0xb97   :  { %v1188_v36 = vadd.f32 %v1732_v35, %v1553_v34  ;;  %v1179_v37 = vpop.f32.mrb[25].mxu0 }
 0xb98   :  { %v1180_v38 = vadd.f32 %v1553_v34, %v1179_v37  ;;  %v1733_v39 = vpop.f32.mrb[26].mxu0 }
 0xb99   :  { %v1196_v40 = vmax.f32 %v1188_v36, 0.0  ;;  %v1191_v41 = vadd.f32 %v1733_v39, %v1553_v34  ;;  %v1182_v42 = vpop.f32.mrb[27].mxu0 }
 0xb9a   :  { %v1194_v44 = vmax.f32 %v1180_v38, 0.0  ;;  %v1183_v45 = vadd.f32 %v1553_v34, %v1182_v42 }
 0xb9b   :  { %v1200_v46 = vmul.f32 %v1196_v40, %v2045_v48  ;;  %v1197_v47 = vmax.f32 %v1191_v41, 0.0 }
 0xb9c   :  { %v1198_v51 = vmul.f32 %v1194_v44, %v2047_v50  ;;  %v1195_v52 = vmax.f32 %v1183_v45, 0.0 }
 0xb9d   :  { %v1212_v53 = vmul.f32 %v1559_v43, %v1200_v46  ;;  %v1201_v54 = vmul.f32 %v1197_v47, %v2052_v61 }
 0xb9e   :  { %v1210_v55 = vmul.f32 %v1559_v43, %v1198_v51  ;;  %v1199_v56 = vmul.f32 %v1195_v52, %v2059_v4 }
 0xb9f   :  { %v1224_v57 = vadd.f32 %v1561_v49, %v1212_v53  ;;  %v1213_v58 = vmul.f32 %v1559_v43, %v1201_v54 }
 0xba0   :  { %v1222_v59 = vadd.f32 %v1561_v49, %v1210_v55  ;;  %v1211_v60 = vmul.f32 %v1559_v43, %v1199_v56 }
 0xba1   :  { %v1228_v62 = vmax.f32 %v1224_v57, 0.0  ;;  %v1225_v48 = vadd.f32 %v1561_v49, %v1213_v58 }
 0xba2   :  { %v1226_v63 = vmax.f32 %v1222_v59, 0.0  ;;  %v1223_v0 = vadd.f32 %v1561_v49, %v1211_v60 }
 0xba3   :  { %v1229_v12 = vmax.f32 %v1225_v48, 0.0  ;;  %v1232_v1 = vadd.f32 %v1995_v6, %v1228_v62  ;;  %v1385_v6 = vld [vmem:[%s2218_s12] sm:$0xff] }
 0xba4   :  { %v1227_v2 = vmax.f32 %v1223_v0, 0.0  ;;  %v1230_v50 = vadd.f32 %v1226_v63, %v1997_v7  ;;  %v1386_v7 = vld [vmem:[%s2218_s12 + $0x8] sm:$0xff] }
 0xba5   :  { %v1233_v3 = vadd.f32 %v1999_v8, %v1229_v12  ;;  %v1387_v8 = vld [vmem:[%s2218_s12 + $0x10] sm:$0xff] }
 0xba6   :  { %v1231_v61 = vadd.f32 %v1227_v2, %v2001_v9  ;;  %v1780_v9 = vpack.c.bf16 %v1386_v7, %v1385_v6  ;;  %v1783_v13 = vpack.c.bf16 %v1388_v11, %v1387_v8 }
 0xba7   :  { %v1771_v10 = vpack.c.bf16 %v1233_v3, %v1232_v1 }
 0xba8   :  { %v1768_v4 = vpack.c.bf16 %v1231_v61, %v1230_v50 }
 0xbaa   :  { %1769 = vmatpush3.bf16.msra.mxu1 %v1768_v4 }
 0xbab   :  { %1770 = vmatprep.subr.bf16.mxu1 %v1867_v26 }
 0xbae   :  { %1772 = vmatpush3.bf16.msra.mxu1 %v1771_v10 }
 0xbaf   :  { %1779 = vmatprep.subr.bf16.mxu1 %v1867_v26 }
 0xbb1   :  { %1743 = vmatmul.mubr.msk.f32.vlgmr.msra.gmra.mrb[24].mxu1 %vm163_vm1, %v1234_v5 }
 0xbb2   :  { %1764 = vmatprep.mubr.msk.f32.mxu1 %vm1868_vm2, %v1869_v27  ;;  %1781 = vmatpush3.bf16.msra.mxu1 %v1780_v9 }
 0xbb3   :  { %1782 = vmatprep.subr.bf16.mxu1 %v1867_v26 }
 0xbb6   :  { %1784 = vmatpush3.bf16.msra.mxu1 %v1783_v13 }
 0xc84   :  { %v1304_v14 = vpop.f32.mrb[24].mxu1 }
 0xc85   :  { %v1744_v15 = vpop.f32.mrb[25].mxu1  ;;  %1754 = vmatmul.mubr.msk.f32.vlgmr.msra.gmra.mrb[28].mxu0 %vm163_vm1, %v1304_v14 }
 0xd58   :  { %v1381_v16 = vpop.f32.mrb[28].mxu0 }
 0xd59   :  { %v1755_v17 = vpop.f32.mrb[29].mxu0  ;;  %1765 = vmatmul.mubr.msk.f32.vlgmr.msra.gmra.mrb[26].mxu1 %vm163_vm1, %v1381_v16 }
 0xe2c   :  { %v1465_v19 = vpop.f32.mrb[26].mxu1 }
 0xe2d   :  { %v1466_v20 = vadd.f32 %v1564_v18, %v1465_v19  ;;  %v1766_v21 = vpop.f32.mrb[27].mxu1 }
 0xe2f   :  { %1470 = vst.msk [vmem:[%s2220_s14] sm:$0x3] %vm1469_vm3, %v1466_v20 }
 0xe30   :  { %1475 = vsyncpa [#allocation4], 1 }
 0xe31   :  { %1476 = vsyncpa [#allocation6], 1 }

</bundles_post_ra>
